<compile_context>
chip_gen: v5e
topology: v5e:2x2
jax: 0.10.0
libtpu: 0.0.40
codegen_flags: <defaults>
</compile_context>

<pallas_src>
import jax
import jax.numpy as jnp
from jax.experimental import pallas as pl
from jax.experimental.pallas import tpu as pltpu

D_IN = 224
D_H1 = 2 * 3 * 224   # 1344
D_H2 = 60
D_OUT = 2

D_H2P = 128          # 60 -> padded to one full lane tile
D_OUTP = 128         # 2  -> padded to one full lane tile (lane-dense output stores)


def _round_up(n, m):
    return ((n + m - 1) // m) * m


def _epilogue_dtype():
    """bf16 bias/ReLU epilogue only where the VPU has bf16 ALUs (v6e / v7x)."""
    try:
        kind = jax.devices()[0].device_kind.lower()
    except Exception:
        return jnp.float32
    if ("v6" in kind) or ("v7" in kind) or ("7x" in kind):
        return jnp.bfloat16
    return jnp.float32


def _choose_tm(B, tm_desired):
    """Sublane-aligned batch tile; shrink until batch padding is <= ~12.5% of B."""
    tm = max(8, min(_round_up(tm_desired, 8), _round_up(B, 8)))
    while tm > 8 and (_round_up(B, tm) - B) * 8 > B:
        tm = max(8, _round_up(tm // 2, 8))
    return tm


def make_mlp_kernel(epilogue_dtype):
    def mlp_kernel(x_ref, w0_ref, b0_ref, w1_ref, b1_ref, w2_ref, b2_ref, o_ref):
        # fc: [tm, 224](bf16, cast in-kernel) @ [224, 1344](bf16) -> f32 acc
        x = x_ref[...].astype(jnp.bfloat16)
        h0 = jnp.dot(x, w0_ref[...], preferred_element_type=jnp.float32)
        h0 = jnp.maximum(h0.astype(epilogue_dtype) + b0_ref[...], 0).astype(jnp.bfloat16)

        # fc1: [tm, 1344] @ [1344, 128] (cols >= 60 zero-padded) -> ReLU
        h1 = jnp.dot(h0, w1_ref[...], preferred_element_type=jnp.float32)
        h1 = jnp.maximum(h1.astype(epilogue_dtype) + b1_ref[...], 0).astype(jnp.bfloat16)

        # fc2: [tm, 128] @ [128, 128] (rows >= 60 and cols >= 2 zero-padded) -> logits
        logits = jnp.dot(h1, w2_ref[...], preferred_element_type=jnp.float32)
        logits = logits + b2_ref[...]
        o_ref[...] = logits.astype(o_ref.dtype)   # bf16, lane-dense 128-wide store

    return mlp_kernel


def convnet_forward(x, w0, b0, w1, b1, w2, b2, *, tm=512):
    """x: [B, 224] f32. Weights as [in, out], biases as [1, out], all f32.

    Returns softmax probabilities of shape [B, 2] (f32)."""
    B = x.shape[0]
    tm = _choose_tm(B, tm)
    Bp = _round_up(B, tm)

    xp = x
    if Bp != B:
        xp = jnp.pad(x, ((0, Bp - B), (0, 0)))

    ep_dt = _epilogue_dtype()

    # Weights pre-cast once (VMEM-resident); narrow dims zero-padded to 128 lanes.
    w0b = w0.astype(jnp.bfloat16)
    b0e = b0.astype(ep_dt)
    w1p = jnp.pad(w1, ((0, 0), (0, D_H2P - D_H2))).astype(jnp.bfloat16)
    b1p = jnp.pad(b1, ((0, 0), (0, D_H2P - D_H2))).astype(ep_dt)
    w2p = jnp.pad(w2, ((0, D_H2P - D_H2), (0, D_OUTP - D_OUT))).astype(jnp.bfloat16)
    b2p = jnp.pad(b2, ((0, 0), (0, D_OUTP - D_OUT)))   # f32 (tiny [tm,128] add)

    grid = (Bp // tm,)

    flops = 2 * Bp * (D_IN * D_H1 + D_H1 * D_H2P + D_H2P * D_OUTP)
    bytes_accessed = (
        xp.size * 4 + w0b.size * 2 + w1p.size * 2 + w2p.size * 2
        + b0e.size * ep_dt.dtype.itemsize + b1p.size * ep_dt.dtype.itemsize
        + b2p.size * 4 + Bp * D_OUTP * 2
    )
    cost = pl.CostEstimate(flops=flops, transcendentals=0, bytes_accessed=bytes_accessed)

    # Rough VMEM footprint: double-buffered x/out tiles + resident weights (2x) + h0/h1
    # f32 accumulators and their bf16 copies.
    weight_bytes = (D_IN * D_H1 + D_H1 * D_H2P + D_H2P * D_OUTP) * 2 + (D_H1 + D_H2P + D_OUTP) * 4
    est = (2 * weight_bytes
           + 2 * tm * (D_IN * 4 + D_OUTP * 2)
           + tm * D_H1 * 6 + tm * D_H2P * 6)
    vmem_limit = int(min(48 << 20, max(32 << 20, 2 * est)))   # <= 48 MiB: safe on v7x's 64 MiB

    out_padded = pl.pallas_call(
        make_mlp_kernel(ep_dt),
        out_shape=jax.ShapeDtypeStruct((Bp, D_OUTP), jnp.bfloat16),
        grid_spec=pltpu.PrefetchScalarGridSpec(
            num_scalar_prefetch=0,
            grid=grid,
            in_specs=[
                pl.BlockSpec((tm, D_IN), lambda i: (i, 0)),       # x: streamed f32 per tile
                pl.BlockSpec((D_IN, D_H1), lambda i: (0, 0)),     # w0: VMEM-resident
                pl.BlockSpec((1, D_H1), lambda i: (0, 0)),        # b0
                pl.BlockSpec((D_H1, D_H2P), lambda i: (0, 0)),    # w1 (padded)
                pl.BlockSpec((1, D_H2P), lambda i: (0, 0)),       # b1 (padded)
                pl.BlockSpec((D_H2P, D_OUTP), lambda i: (0, 0)),  # w2 (padded)
                pl.BlockSpec((1, D_OUTP), lambda i: (0, 0)),      # b2 (padded)
            ],
            out_specs=pl.BlockSpec((tm, D_OUTP), lambda i: (i, 0)),
        ),
        compiler_params=pltpu.CompilerParams(
            dimension_semantics=("parallel",),
            vmem_limit_bytes=vmem_limit,
        ),
        cost_estimate=cost,
    )(xp, w0b, b0e, w1p, b1p, w2p, b2p)

    # Slice off batch padding + the 126 padded class lanes; exact softmax in f32 outside
    # the kernel (2-class softmax on [B,2] is trivial for XLA).
    logits = out_padded[:B, :D_OUT].astype(jnp.float32)
    return jax.nn.softmax(logits, axis=-1)


def init_linear(key, fan_in, fan_out):
    """Deterministic PyTorch-style (kaiming-uniform-ish) init, weight stored as [in, out]."""
    kw, kb = jax.random.split(key)
    bound = 1.0 / (fan_in ** 0.5)
    w = jax.random.uniform(kw, (fan_in, fan_out), jnp.float32, -bound, bound)
    b = jax.random.uniform(kb, (1, fan_out), jnp.float32, -bound, bound)
    return w, b


def _reference_forward(x, w0, b0, w1, b1, w2, b2):
    h0 = jnp.maximum(x @ w0 + b0, 0.0)
    h1 = jnp.maximum(h0 @ w1 + b1, 0.0)
    logits = h1 @ w2 + b2
    return jax.nn.softmax(logits, axis=-1)


if __name__ == "__main__":
    # TODO(synk): the unused `models.inception_v3` constructed in __init__ (never called in
    # forward) is intentionally omitted.
    key = jax.random.PRNGKey(0)
    kx, k0, k1, k2 = jax.random.split(key, 4)

    batch = 8
    x = jax.random.normal(kx, (batch, D_IN), dtype=jnp.float32)

    w0, b0 = init_linear(k0, D_IN, D_H1)
    w1, b1 = init_linear(k1, D_H1, D_H2)
    w2, b2 = init_linear(k2, D_H2, D_OUT)

    out = convnet_forward(x, w0, b0, w1, b1, w2, b2)
    out = jax.block_until_ready(out)

    # sanity: shape, rows sum to 1 (exact f32 softmax), close to f32 reference (bf16 matmuls)
    assert out.shape == (batch, D_OUT)
    assert bool(jnp.allclose(jnp.sum(out, axis=-1), 1.0, atol=1e-3))
    ref = _reference_forward(x, w0, b0, w1, b1, w2, b2)
    assert bool(jnp.allclose(out, ref, atol=5e-2))

    print("KERNEL_OK")
</pallas_src>

<mosaic_0001>
module attributes {stable_mosaic.version = 11 : i64} {
  func.func @mlp_kernel(%arg0: i32, %arg1: memref<8x224xf32, #tpu.memory_space<vmem>>, %arg2: memref<224x1344xbf16, #tpu.memory_space<vmem>>, %arg3: memref<1x1344xf32, #tpu.memory_space<vmem>>, %arg4: memref<1344x128xbf16, #tpu.memory_space<vmem>>, %arg5: memref<1x128xf32, #tpu.memory_space<vmem>>, %arg6: memref<128x128xbf16, #tpu.memory_space<vmem>>, %arg7: memref<1x128xf32, #tpu.memory_space<vmem>>, %arg8: memref<8x128xbf16, #tpu.memory_space<vmem>>) attributes {dimension_semantics = [#tpu.dimension_semantics<parallel>], iteration_bounds = array<i64: 1>, scalar_prefetch = 0 : i64, scratch_operands = 0 : i64, tpu.core_type = #tpu.core_type<tc>, window_params = [{transform_indices = @transform_0, window_bounds = array<i64: 8, 224>}, {pipeline_mode = #tpu.pipeline_mode<synchronous>, transform_indices = @transform_1, window_bounds = array<i64: 224, 1344>}, {pipeline_mode = #tpu.pipeline_mode<synchronous>, transform_indices = @transform_2, window_bounds = array<i64: 1, 1344>}, {pipeline_mode = #tpu.pipeline_mode<synchronous>, transform_indices = @transform_3, window_bounds = array<i64: 1344, 128>}, {pipeline_mode = #tpu.pipeline_mode<synchronous>, transform_indices = @transform_4, window_bounds = array<i64: 1, 128>}, {pipeline_mode = #tpu.pipeline_mode<synchronous>, transform_indices = @transform_5, window_bounds = array<i64: 128, 128>}, {pipeline_mode = #tpu.pipeline_mode<synchronous>, transform_indices = @transform_6, window_bounds = array<i64: 1, 128>}, {transform_indices = @transform_7, window_bounds = array<i64: 8, 128>}]} {
    %c0 = arith.constant 0 : index
    %c0_0 = arith.constant 0 : index
    %0 = vector.load %arg1[%c0, %c0_0] : memref<8x224xf32, #tpu.memory_space<vmem>>, vector<8x224xf32>
    %1 = arith.truncf %0 : vector<8x224xf32> to vector<8x224xbf16>
    %c0_1 = arith.constant 0 : index
    %c0_2 = arith.constant 0 : index
    %2 = vector.load %arg2[%c0_1, %c0_2] : memref<224x1344xbf16, #tpu.memory_space<vmem>>, vector<224x1344xbf16>
    %cst = arith.constant dense<0.000000e+00> : vector<8x1344xf32>
    %3 = tpu.matmul %1, %2, %cst {dimension_numbers = #tpu.dot_dimension_numbers<[1], [0], [0], [1], [0, 0, 1, 1], [], []>} : vector<8x224xbf16>, vector<224x1344xbf16>, vector<8x1344xf32> -> vector<8x1344xf32>
    %c0_3 = arith.constant 0 : index
    %c0_4 = arith.constant 0 : index
    %4 = vector.load %arg3[%c0_3, %c0_4] : memref<1x1344xf32, #tpu.memory_space<vmem>>, vector<1x1344xf32>
    %5 = vector.broadcast %4 : vector<1x1344xf32> to vector<8x1344xf32>
    %6 = arith.addf %3, %5 : vector<8x1344xf32>
    %cst_5 = arith.constant 0.000000e+00 : f32
    %7 = vector.broadcast %cst_5 : f32 to vector<8x1344xf32>
    %8 = arith.maximumf %6, %7 : vector<8x1344xf32>
    %9 = arith.truncf %8 : vector<8x1344xf32> to vector<8x1344xbf16>
    %c0_6 = arith.constant 0 : index
    %c0_7 = arith.constant 0 : index
    %10 = vector.load %arg4[%c0_6, %c0_7] : memref<1344x128xbf16, #tpu.memory_space<vmem>>, vector<1344x128xbf16>
    %cst_8 = arith.constant dense<0.000000e+00> : vector<8x128xf32>
    %11 = tpu.matmul %9, %10, %cst_8 {dimension_numbers = #tpu.dot_dimension_numbers<[1], [0], [0], [1], [0, 0, 1, 1], [], []>} : vector<8x1344xbf16>, vector<1344x128xbf16>, vector<8x128xf32> -> vector<8x128xf32>
    %c0_9 = arith.constant 0 : index
    %c0_10 = arith.constant 0 : index
    %12 = vector.load %arg5[%c0_9, %c0_10] : memref<1x128xf32, #tpu.memory_space<vmem>>, vector<1x128xf32>
    %13 = vector.broadcast %12 : vector<1x128xf32> to vector<8x128xf32>
    %14 = arith.addf %11, %13 : vector<8x128xf32>
    %cst_11 = arith.constant 0.000000e+00 : f32
    %15 = vector.broadcast %cst_11 : f32 to vector<8x128xf32>
    %16 = arith.maximumf %14, %15 : vector<8x128xf32>
    %17 = arith.truncf %16 : vector<8x128xf32> to vector<8x128xbf16>
    %c0_12 = arith.constant 0 : index
    %c0_13 = arith.constant 0 : index
    %18 = vector.load %arg6[%c0_12, %c0_13] : memref<128x128xbf16, #tpu.memory_space<vmem>>, vector<128x128xbf16>
    %cst_14 = arith.constant dense<0.000000e+00> : vector<8x128xf32>
    %19 = tpu.matmul %17, %18, %cst_14 {dimension_numbers = #tpu.dot_dimension_numbers<[1], [0], [0], [1], [0, 0, 1, 1], [], []>} : vector<8x128xbf16>, vector<128x128xbf16>, vector<8x128xf32> -> vector<8x128xf32>
    %c0_15 = arith.constant 0 : index
    %c0_16 = arith.constant 0 : index
    %20 = vector.load %arg7[%c0_15, %c0_16] : memref<1x128xf32, #tpu.memory_space<vmem>>, vector<1x128xf32>
    %21 = vector.broadcast %20 : vector<1x128xf32> to vector<8x128xf32>
    %22 = arith.addf %19, %21 : vector<8x128xf32>
    %23 = arith.truncf %22 : vector<8x128xf32> to vector<8x128xbf16>
    %c0_17 = arith.constant 0 : index
    %c0_18 = arith.constant 0 : index
    %24 = vector.load %arg8[%c0_17, %c0_18] : memref<8x128xbf16, #tpu.memory_space<vmem>>, vector<8x128xbf16>
    tpu.vector_store %arg8[%c0_17, %c0_18], %23 {strides = array<i32>} : memref<8x128xbf16, #tpu.memory_space<vmem>>, vector<8x128xbf16>,
    return
  }
  func.func @transform_0(%arg0: i32) -> (i32, i32) {
    %c0_i32 = arith.constant 0 : i32
    %c0_i32_0 = arith.constant 0 : i32
    return %arg0, %c0_i32 : i32, i32
  }
  func.func @transform_1(%arg0: i32) -> (i32, i32) {
    %c0_i32 = arith.constant 0 : i32
    %c0_i32_0 = arith.constant 0 : i32
    %c0_i32_1 = arith.constant 0 : i32
    return %c0_i32, %c0_i32_0 : i32, i32
  }
  func.func @transform_2(%arg0: i32) -> (i32, i32) {
    %c0_i32 = arith.constant 0 : i32
    %c0_i32_0 = arith.constant 0 : i32
    %c0_i32_1 = arith.constant 0 : i32
    return %c0_i32, %c0_i32_0 : i32, i32
  }
  func.func @transform_3(%arg0: i32) -> (i32, i32) {
    %c0_i32 = arith.constant 0 : i32
    %c0_i32_0 = arith.constant 0 : i32
    %c0_i32_1 = arith.constant 0 : i32
    return %c0_i32, %c0_i32_0 : i32, i32
  }
  func.func @transform_4(%arg0: i32) -> (i32, i32) {
    %c0_i32 = arith.constant 0 : i32
    %c0_i32_0 = arith.constant 0 : i32
    %c0_i32_1 = arith.constant 0 : i32
    return %c0_i32, %c0_i32_0 : i32, i32
  }
  func.func @transform_5(%arg0: i32) -> (i32, i32) {
    %c0_i32 = arith.constant 0 : i32
    %c0_i32_0 = arith.constant 0 : i32
    %c0_i32_1 = arith.constant 0 : i32
    return %c0_i32, %c0_i32_0 : i32, i32
  }
  func.func @transform_6(%arg0: i32) -> (i32, i32) {
    %c0_i32 = arith.constant 0 : i32
    %c0_i32_0 = arith.constant 0 : i32
    %c0_i32_1 = arith.constant 0 : i32
    return %c0_i32, %c0_i32_0 : i32, i32
  }
  func.func @transform_7(%arg0: i32) -> (i32, i32) {
    %c0_i32 = arith.constant 0 : i32
    %c0_i32_0 = arith.constant 0 : i32
    return %arg0, %c0_i32 : i32, i32
  }
}

</mosaic_0001>

<bundles_post_ra>
// kernel: tpu_custom_call.1
= control target key start
LH: loop header
LB: loop body
LE: loop exit
PB: predicated region body
PF: predicated region fallthrough
CT: control target
= control target key end

     0   :  { %12 = vsyncpa [#allocation3], 0  ;;  %s3850_s0 = inlined_call_operand.hbm [shape: f32[8,224], index: 0, kind: input, shape index: {}]   ;;  %s3851_s1 = inlined_call_operand.hbm [shape: bf16[224,1344], index: 1, kind: input, shape index: {}]   ;;  %s3852_s2 = inlined_call_operand.hbm [shape: f32[1,1344], index: 2, kind: input, shape index: {}]   ;;  %s3853_s3 = inlined_call_operand.hbm [shape: bf16[1344,128], index: 3, kind: input, shape index: {}]   ;;  %s3854_s4 = inlined_call_operand.vmem [shape: f32[1,128], index: 4, kind: input, shape index: {}]   ;;  %s3855_s5 = inlined_call_operand.hbm [shape: bf16[128,128], index: 5, kind: input, shape index: {}]   ;;  %s3856_s6 = inlined_call_operand.vmem [shape: f32[1,128], index: 6, kind: input, shape index: {}]   ;;  %s3857_s7 = inlined_call_operand.hbm [shape: bf16[8,128], index: 7, kind: output, shape index: {}]  }
   0x1   :  { %13 = vsyncpa [#allocation6], 0 }
   0x2   :  { %14 = vsyncpa [#allocation9], 0  ;;  %s31_s26 = sshll.u32 %s3851_s1, 4  ;;  %s32_s26 = int_to_ptr.hbm [resolvable:$true] %s31_s26 }
   0x3   :  { %15 = vsyncpa [#allocation4], 0  ;;  %s3729_s27 = smov [#allocation5]   ;;  %s55_s8 = sshll.u32 %s3853_s3, 4  ;;  %s56_s8 = int_to_ptr.hbm [resolvable:$true] %s55_s8 }
   0x4   :  { %s33_s28 = sshll.u32 %s3729_s27, 4  ;;  %s3730_s9 = smov 704   ;;  %s34_s28 = int_to_ptr.vmem [resolvable:$true] %s33_s28 }
   0x5   :  { %s3731_s10 = smov 44   ;;  %s3732_s11 = smov [#allocation8]  }
   0x6   :  { %39 = dma.hbm_to_vmem [thread:$0]  %s32_s26, 19712, %s34_s28, [#allocation6], %s3730_s9, %s3730_s9, %s3731_s10  }
   0x7   :  { %s57_s12 = sshll.u32 %s3732_s11, 4  ;;  %s3733_s13 = smov 64   ;;  %s58_s12 = int_to_ptr.vmem [resolvable:$true] %s57_s12 }
   0x8   :  { %s3734_s14 = smov 4   ;;  %s21_s16 = sshll.u32 %s3850_s0, 4  ;;  %s22_s16 = int_to_ptr.hbm [resolvable:$true] %s21_s16 }
   0x9   :  { %63 = dma.hbm_to_vmem [thread:$0]  %s56_s8, 10752, %s58_s12, [#allocation9], %s3733_s13, %s3733_s13, %s3734_s14  }
   0xa   :  { %s3735_s17 = smov [#allocation2]   ;;  %s45_s20 = sshll.u32 %s3852_s2, 4  ;;  %s46_s20 = int_to_ptr.hbm [resolvable:$true] %s45_s20 }
   0xb   :  { %s23_s18 = sshll.u32 %s3735_s17, 4  ;;  %s3736_s21 = smov [#allocation7]   ;;  %s24_s18 = int_to_ptr.vmem [resolvable:$true] %s23_s18 }
   0xc   :  { %26 = dma.hbm_to_vmem [thread:$0]  %s22_s16, 256, %s24_s18, [#allocation3]  }
   0xd   :  { %s47_s22 = sshll.u32 %s3736_s21, 4  ;;  %s70_s25 = sshll.u32 %s3855_s5, 4  ;;  %s48_s22 = int_to_ptr.vmem [resolvable:$true] %s47_s22  ;;  %s71_s25 = int_to_ptr.hbm [resolvable:$true] %s70_s25 }
   0xe   :  { %50 = dma.hbm_to_vmem [thread:$0]  %s46_s20, 176, %s48_s22, [#allocation6]  }
   0xf   :  { %s3737_s0 = smov [#allocation10]  }
  0x10   :  { %s72_s26 = sshll.u32 %s3737_s0, 4  ;;  %s73_s26 = int_to_ptr.vmem [resolvable:$true] %s72_s26 }
  0x11   :  { %78 = dma.hbm_to_vmem [thread:$0]  %s71_s25, 1024, %s73_s26, [#allocation9], %s3733_s13, %s3733_s13, %s3734_s14  }
  0x12   :  { %3721 = dma.done.wait [#allocation3], 256  }
  0x13   :  { %3722 = vsyncadd [#allocation3], 4294967040 }
  0x14   :  { %3723 = dma.done.wait [#allocation6], 19888  }
  0x15   :  { %3724 = vsyncadd [#allocation6], 4294947408 }
  0x16   :  { %3725 = dma.done.wait [#allocation9], 11776  }
  0x17   :  { %3726 = vsyncadd [#allocation9], 4294955520  ;;  %v2633_v0 = vld [vmem:[#allocation5 + $0x268] sm:$0xf]  ;;  %v3401_v1 = vld [vmem:[#allocation5 + $0x290] sm:$0xf0] }
  0x18   :  { %v2897_v2 = vld [vmem:[#allocation5 + $0x478] sm:$0xf]  ;;  %v2634_v3 = vor.u32 %v3401_v1, %v2633_v0  ;;  %v3467_v4 = vld [vmem:[#allocation5 + $0x4a0] sm:$0xf0]  ;;  %v3396_v5 = vld [vmem:[#allocation5 + $0x26c] sm:$0xf] }
  0x19   :  { %v2635_v6 = vld [vmem:[#allocation5 + $0x294] sm:$0xf0]  ;;  %v2898_v7 = vor.u32 %v3467_v4, %v2897_v2  ;;  %v3462_v9 = vld [vmem:[#allocation5 + $0x47c] sm:$0xf]  ;;  %v2899_v10 = vld [vmem:[#allocation5 + $0x4a4] sm:$0xf0] }
  0x1a   :  { %v2638_v8 = vor.u32 %v3396_v5, %v2635_v6  ;;  %v2589_v11 = vld [vmem:[#allocation5 + $0x210] sm:$0xf]  ;;  %1088 = vmatpush.bf16.msra.mxu0 %v2634_v3  ;;  %v2902_v12 = vor.u32 %v3462_v9, %v2899_v10  ;;  %v3390_v13 = vld [vmem:[#allocation5 + $0x238] sm:$0xf0]  ;;  %v2853_v14 = vld [vmem:[#allocation5 + $0x420] sm:$0xf] }
  0x1b   :  { %v3456_v15 = vld [vmem:[#allocation5 + $0x448] sm:$0xf0]  ;;  %1103 = vmatpush.bf16.msra.mxu1 %v2898_v7  ;;  %v2590_v16 = vor.u32 %v3390_v13, %v2589_v11  ;;  %v3385_v18 = vld [vmem:[#allocation5 + $0x214] sm:$0xf]  ;;  %v2591_v19 = vld [vmem:[#allocation5 + $0x23c] sm:$0xf0] }
  0x1c   :  { %1114 = vmatpush.bf16.msra.mxu2 %v2638_v8  ;;  %v2854_v17 = vor.u32 %v3456_v15, %v2853_v14  ;;  %v3451_v20 = vld [vmem:[#allocation5 + $0x424] sm:$0xf]  ;;  %1129 = vmatpush.bf16.msra.mxu3 %v2902_v12  ;;  %v2594_v21 = vor.u32 %v3385_v18, %v2591_v19  ;;  %v2855_v22 = vld [vmem:[#allocation5 + $0x44c] sm:$0xf0]  ;;  %v2545_v23 = vld [vmem:[#allocation5 + $0x1b8] sm:$0xf] }
  0x1d   :  { %v3379_v24 = vld [vmem:[#allocation5 + $0x1e0] sm:$0xf0]  ;;  %v2858_v25 = vor.u32 %v3451_v20, %v2855_v22  ;;  %v2809_v26 = vld [vmem:[#allocation5 + $0x3c8] sm:$0xf]  ;;  %v3445_v27 = vld [vmem:[#allocation5 + $0x3f0] sm:$0xf0] }
  0x1e   :  { %v3374_v28 = vld [vmem:[#allocation5 + $0x1bc] sm:$0xf]  ;;  %1089 = vmatpush.bf16.msra.mxu0 %v2590_v16  ;;  %v2546_v29 = vor.u32 %v3379_v24, %v2545_v23  ;;  %v2547_v30 = vld [vmem:[#allocation5 + $0x1e4] sm:$0xf0]  ;;  %v3440_v31 = vld [vmem:[#allocation5 + $0x3cc] sm:$0xf]  ;;  %v2810_v33 = vor.u32 %v3445_v27, %v2809_v26 }
  0x1f   :  { %v2811_v32 = vld [vmem:[#allocation5 + $0x3f4] sm:$0xf0]  ;;  %1104 = vmatpush.bf16.msra.mxu1 %v2854_v17  ;;  %v2550_v34 = vor.u32 %v3374_v28, %v2547_v30  ;;  %v2501_v35 = vld [vmem:[#allocation5 + $0x160] sm:$0xf]  ;;  %v3368_v36 = vld [vmem:[#allocation5 + $0x188] sm:$0xf0] }
  0x20   :  { %1115 = vmatpush.bf16.msra.mxu2 %v2594_v21  ;;  %v2765_v37 = vld [vmem:[#allocation5 + $0x370] sm:$0xf]  ;;  %1130 = vmatpush.bf16.msra.mxu3 %v2858_v25  ;;  %v2814_v38 = vor.u32 %v3440_v31, %v2811_v32  ;;  %v3434_v39 = vld [vmem:[#allocation5 + $0x398] sm:$0xf0]  ;;  %v3363_v40 = vld [vmem:[#allocation5 + $0x164] sm:$0xf]  ;;  %v2502_v44 = vor.u32 %v3368_v36, %v2501_v35 }
  0x21   :  { %v2503_v41 = vld [vmem:[#allocation5 + $0x18c] sm:$0xf0]  ;;  %v3429_v42 = vld [vmem:[#allocation5 + $0x374] sm:$0xf]  ;;  %v2767_v43 = vld [vmem:[#allocation5 + $0x39c] sm:$0xf0]  ;;  %v2766_v45 = vor.u32 %v3434_v39, %v2765_v37 }
  0x22   :  { %1090 = vmatpush.bf16.msra.mxu0 %v2546_v29  ;;  %v2506_v46 = vor.u32 %v3363_v40, %v2503_v41  ;;  %v2457_v47 = vld [vmem:[#allocation5 + $0x108] sm:$0xf]  ;;  %v3357_v48 = vld [vmem:[#allocation5 + $0x130] sm:$0xf0]  ;;  %v2721_v49 = vld [vmem:[#allocation5 + $0x318] sm:$0xf]  ;;  %v2770_v50 = vor.u32 %v3429_v42, %v2767_v43 }
  0x23   :  { %1105 = vmatpush.bf16.msra.mxu1 %v2810_v33  ;;  %v3423_v51 = vld [vmem:[#allocation5 + $0x340] sm:$0xf0]  ;;  %v3352_v52 = vld [vmem:[#allocation5 + $0x10c] sm:$0xf]  ;;  %v2459_v53 = vld [vmem:[#allocation5 + $0x134] sm:$0xf0]  ;;  %v2458_v56 = vor.u32 %v3357_v48, %v2457_v47 }
  0x24   :  { %1116 = vmatpush.bf16.msra.mxu2 %v2550_v34  ;;  %1131 = vmatpush.bf16.msra.mxu3 %v2814_v38  ;;  %v3418_v54 = vld [vmem:[#allocation5 + $0x31c] sm:$0xf]  ;;  %v2723_v55 = vld [vmem:[#allocation5 + $0x344] sm:$0xf0]  ;;  %v2413_v57 = vld [vmem:[#allocation5 + $0xb0] sm:$0xf]  ;;  %v2722_v58 = vor.u32 %v3423_v51, %v2721_v49  ;;  %v2462_v59 = vor.u32 %v3352_v52, %v2459_v53 }
  0x25   :  { %v3346_v60 = vld [vmem:[#allocation5 + $0xd8] sm:$0xf0]  ;;  %v2677_v61 = vld [vmem:[#allocation5 + $0x2c0] sm:$0xf]  ;;  %v3412_v62 = vld [vmem:[#allocation5 + $0x2e8] sm:$0xf0]  ;;  %v2726_v63 = vor.u32 %v3418_v54, %v2723_v55 }
  0x26   :  { %1091 = vmatpush.bf16.msra.mxu0 %v2502_v44  ;;  %v3341_v0 = vld [vmem:[#allocation5 + $0xb4] sm:$0xf]  ;;  %v2415_v1 = vld [vmem:[#allocation5 + $0xdc] sm:$0xf0]  ;;  %v3407_v2 = vld [vmem:[#allocation5 + $0x2c4] sm:$0xf]  ;;  %v2414_v6 = vor.u32 %v3346_v60, %v2413_v57  ;;  %v2678_v9 = vor.u32 %v3412_v62, %v2677_v61 }
  0x27   :  { %1106 = vmatpush.bf16.msra.mxu1 %v2766_v45  ;;  %v2679_v3 = vld [vmem:[#allocation5 + $0x2ec] sm:$0xf0]  ;;  %v3402_v5 = vld [vmem:[#allocation5 + $0x298] sm:$0xf0]  ;;  %v2905_v7 = vld [vmem:[#allocation5 + $0x480] sm:$0xf]  ;;  %v2418_v10 = vor.u32 %v3341_v0, %v2415_v1 }
  0x28   :  { %1117 = vmatpush.bf16.msra.mxu2 %v2506_v46  ;;  %1132 = vmatpush.bf16.msra.mxu3 %v2770_v50  ;;  %v2641_v4 = vld [vmem:[#allocation5 + $0x270] sm:$0xf]  ;;  %v3468_v8 = vld [vmem:[#allocation5 + $0x4a8] sm:$0xf0]  ;;  %v2369_v11 = vld [vmem:[#allocation5 + $0x58] sm:$0xf]  ;;  %v2682_v13 = vor.u32 %v3407_v2, %v2679_v3 }
  0x29   :  { %v3335_v12 = vld [vmem:[#allocation5 + $0x80] sm:$0xf0]  ;;  %v2642_v14 = vor.u32 %v3402_v5, %v2641_v4  ;;  %v3330_v15 = vld [vmem:[#allocation5 + $0x5c] sm:$0xf]  ;;  %v2371_v16 = vld [vmem:[#allocation5 + $0x84] sm:$0xf0]  ;;  %v2906_v18 = vor.u32 %v3468_v8, %v2905_v7 }
  0x2a   :  { %1092 = vmatpush.bf16.msra.mxu0 %v2458_v56  ;;  %v2597_v17 = vld [vmem:[#allocation5 + $0x218] sm:$0xf]  ;;  %v3391_v19 = vld [vmem:[#allocation5 + $0x240] sm:$0xf0]  ;;  %v2861_v20 = vld [vmem:[#allocation5 + $0x428] sm:$0xf]  ;;  %v2370_v22 = vor.u32 %v3335_v12, %v2369_v11  ;;  %v2374_v26 = vor.u32 %v3330_v15, %v2371_v16 }
  0x2b   :  { %1107 = vmatpush.bf16.msra.mxu1 %v2722_v58  ;;  %v3457_v21 = vld [vmem:[#allocation5 + $0x450] sm:$0xf0]  ;;  %v2325_v23 = vld [vmem:[#allocation5] sm:$0xf]  ;;  %v3324_v24 = vld [vmem:[#allocation5 + $0x28] sm:$0xf0]  ;;  %v2598_v30 = vor.u32 %v3391_v19, %v2597_v17 }
  0x2c   :  { %1118 = vmatpush.bf16.msra.mxu2 %v2462_v59  ;;  %1133 = vmatpush.bf16.msra.mxu3 %v2726_v63  ;;  %v3319_v25 = vld [vmem:[#allocation5 + $0x4] sm:$0xf]  ;;  %v2327_v27 = vld [vmem:[#allocation5 + $0x2c] sm:$0xf0]  ;;  %v2553_v28 = vld [vmem:[#allocation5 + $0x1c0] sm:$0xf]  ;;  %v2862_v34 = vor.u32 %v3457_v21, %v2861_v20  ;;  %v2326_v38 = vor.u32 %v3324_v24, %v2325_v23 }
  0x2d   :  { %v103_v29 = vld [vmem:[#allocation2 + $0x8] sm:$0xff]  ;;  %v3397_v31 = vld [vmem:[#allocation5 + $0x274] sm:$0xf]  ;;  %v2643_v32 = vld [vmem:[#allocation5 + $0x29c] sm:$0xf0]  ;;  %vm1084_vm0 = vcmask 785408   ;;  %v2330_v41 = vor.u32 %v3319_v25, %v2327_v27 }
  0x2e   :  { %1093 = vmatpush.bf16.msra.mxu0 %v2414_v6  ;;  %v3794_v33 = vpack.c.bf16 %v103_v29, %v103_v29  ;;  %v3380_v35 = vld [vmem:[#allocation5 + $0x1e8] sm:$0xf0]  ;;  %v3463_v36 = vld [vmem:[#allocation5 + $0x484] sm:$0xf]  ;;  %v2907_v37 = vld [vmem:[#allocation5 + $0x4ac] sm:$0xf0]  ;;  %v2646_v42 = vor.u32 %v3397_v31, %v2643_v32 }
  0x2f   :  { %1108 = vmatpush.bf16.msra.mxu1 %v2678_v9  ;;  %v2817_v39 = vld [vmem:[#allocation5 + $0x3d0] sm:$0xf]  ;;  %v3446_v40 = vld [vmem:[#allocation5 + $0x3f8] sm:$0xf0]  ;;  %v2554_v44 = vor.u32 %v3380_v35, %v2553_v28  ;;  %v2910_v45 = vor.u32 %v3463_v36, %v2907_v37  ;;  %v2509_v46 = vld [vmem:[#allocation5 + $0x168] sm:$0xf] }
  0x30   :  { %1119 = vmatpush.bf16.msra.mxu2 %v2418_v10  ;;  %1134 = vmatpush.bf16.msra.mxu3 %v2682_v13  ;;  %v102_v43 = vld [vmem:[#allocation2] sm:$0xff]  ;;  %v3386_v47 = vld [vmem:[#allocation5 + $0x21c] sm:$0xf]  ;;  %v2599_v48 = vld [vmem:[#allocation5 + $0x244] sm:$0xf0]  ;;  %v2818_v49 = vor.u32 %v3446_v40, %v2817_v39  ;;  %vm2072_vm1 = vcmask 523264  }
  0x31   :  { %v3369_v50 = vld [vmem:[#allocation5 + $0x190] sm:$0xf0]  ;;  %v3452_v51 = vld [vmem:[#allocation5 + $0x42c] sm:$0xf]  ;;  %v2863_v52 = vld [vmem:[#allocation5 + $0x454] sm:$0xf0]  ;;  %v3800_v55 = vpack.c.bf16 %v102_v43, %v102_v43  ;;  %v2602_v56 = vor.u32 %v3386_v47, %v2599_v48 }
  0x32   :  { %1094 = vmatpush.bf16.msra.mxu0 %v2370_v22  ;;  %2939 = vmatmul.msk.bf16.vlgmr.msra.gmra.mxu1 %vm1084_vm0, %v3794_v33  ;;  %v2773_v53 = vld [vmem:[#allocation5 + $0x378] sm:$0xf]  ;;  %v3435_v54 = vld [vmem:[#allocation5 + $0x3a0] sm:$0xf0]  ;;  %v2510_v57 = vor.u32 %v3369_v50, %v2509_v46  ;;  %v2866_v58 = vor.u32 %v3452_v51, %v2863_v52  ;;  %v2465_v59 = vld [vmem:[#allocation5 + $0x110] sm:$0xf] }
  0x33   :  { %1140 = vmatpush.bf16.msrb.mxu1 %v2642_v14  ;;  %2940 = vmatmul.msk.bf16.vlgmr.msra.gmra.mxu3 %vm1084_vm0, %v3794_v33  ;;  %v3375_v60 = vld [vmem:[#allocation5 + $0x1c4] sm:$0xf]  ;;  %v2555_v61 = vld [vmem:[#allocation5 + $0x1ec] sm:$0xf0]  ;;  %v2774_v62 = vor.u32 %v3435_v54, %v2773_v53  ;;  %v3358_v63 = vld [vmem:[#allocation5 + $0x138] sm:$0xf0] }
  0x34   :  { %1155 = vmatpush.bf16.msrb.mxu3 %v2906_v18  ;;  %1120 = vmatpush.bf16.msra.mxu2 %v2374_v26  ;;  %v3441_v0 = vld [vmem:[#allocation5 + $0x3d4] sm:$0xf]  ;;  %v2819_v1 = vld [vmem:[#allocation5 + $0x3fc] sm:$0xf0]  ;;  %v3424_v3 = vld [vmem:[#allocation5 + $0x348] sm:$0xf0]  ;;  %v2558_v4 = vor.u32 %v3375_v60, %v2555_v61  ;;  %v2466_v5 = vor.u32 %v3358_v63, %v2465_v59 }
  0x35   :  { %v2729_v2 = vld [vmem:[#allocation5 + $0x320] sm:$0xf]  ;;  %v2822_v6 = vor.u32 %v3441_v0, %v2819_v1  ;;  %v2421_v7 = vld [vmem:[#allocation5 + $0xb8] sm:$0xf]  ;;  %v3364_v8 = vld [vmem:[#allocation5 + $0x16c] sm:$0xf] }
  0x36   :  { %1095 = vmatpush.bf16.msra.mxu0 %v2326_v38  ;;  %v2511_v9 = vld [vmem:[#allocation5 + $0x194] sm:$0xf0]  ;;  %v2730_v10 = vor.u32 %v3424_v3, %v2729_v2  ;;  %v3347_v11 = vld [vmem:[#allocation5 + $0xe0] sm:$0xf0]  ;;  %v3430_v12 = vld [vmem:[#allocation5 + $0x37c] sm:$0xf] }
  0x37   :  { %1141 = vmatpush.bf16.msrb.mxu1 %v2598_v30  ;;  %v2775_v13 = vld [vmem:[#allocation5 + $0x3a4] sm:$0xf0]  ;;  %v3413_v15 = vld [vmem:[#allocation5 + $0x2f0] sm:$0xf0]  ;;  %v2514_v16 = vor.u32 %v3364_v8, %v2511_v9  ;;  %v2649_v17 = vld [vmem:[#allocation5 + $0x278] sm:$0xf]  ;;  %v2422_v19 = vor.u32 %v3347_v11, %v2421_v7 }
  0x38   :  { %1156 = vmatpush.bf16.msrb.mxu3 %v2862_v34  ;;  %1121 = vmatpush.bf16.msra.mxu2 %v2330_v41  ;;  %v2685_v14 = vld [vmem:[#allocation5 + $0x2c8] sm:$0xf]  ;;  %v3403_v18 = vld [vmem:[#allocation5 + $0x2a0] sm:$0xf0]  ;;  %v2778_v20 = vor.u32 %v3430_v12, %v2775_v13  ;;  %v2377_v21 = vld [vmem:[#allocation5 + $0x60] sm:$0xf] }
  0x39   :  { %1096 = vmatmul.bf16.vlgmr.msra.gmra.mxu0 %v3800_v55  ;;  %v3353_v22 = vld [vmem:[#allocation5 + $0x114] sm:$0xf]  ;;  %v2467_v23 = vld [vmem:[#allocation5 + $0x13c] sm:$0xf0]  ;;  %v2686_v24 = vor.u32 %v3413_v15, %v2685_v14  ;;  %v3336_v25 = vld [vmem:[#allocation5 + $0x88] sm:$0xf0]  ;;  %v2650_v28 = vor.u32 %v3403_v18, %v2649_v17 }
  0x3a   :  { %1166 = vmatpush.bf16.msrb.mxu0 %v2646_v42  ;;  %v3419_v26 = vld [vmem:[#allocation5 + $0x324] sm:$0xf]  ;;  %v2731_v27 = vld [vmem:[#allocation5 + $0x34c] sm:$0xf0]  ;;  %v2470_v29 = vor.u32 %v3353_v22, %v2467_v23  ;;  %v2605_v30 = vld [vmem:[#allocation5 + $0x220] sm:$0xf]  ;;  %v2378_v34 = vor.u32 %v3336_v25, %v2377_v21 }
  0x3b   :  { %1142 = vmatpush.bf16.msrb.mxu1 %v2554_v44  ;;  %1122 = vmatmul.bf16.vlgmr.msra.gmra.mxu2 %v3800_v55  ;;  %v3392_v31 = vld [vmem:[#allocation5 + $0x248] sm:$0xf0]  ;;  %v2333_v32 = vld [vmem:[#allocation5 + $0x8] sm:$0xf]  ;;  %v2734_v35 = vor.u32 %v3419_v26, %v2731_v27  ;;  %v3325_v36 = vld [vmem:[#allocation5 + $0x30] sm:$0xf0] }
  0x3c   :  { %1181 = vmatpush.bf16.msrb.mxu2 %v2910_v45  ;;  %1157 = vmatpush.bf16.msrb.mxu3 %v2818_v49  ;;  %v3342_v37 = vld [vmem:[#allocation5 + $0xbc] sm:$0xf]  ;;  %v2423_v38 = vld [vmem:[#allocation5 + $0xe4] sm:$0xf0]  ;;  %v3408_v39 = vld [vmem:[#allocation5 + $0x2cc] sm:$0xf]  ;;  %v2606_v42 = vor.u32 %v3392_v31, %v2605_v30  ;;  %v2334_v49 = vor.u32 %v3325_v36, %v2333_v32 }
  0x3d   :  { %v2687_v40 = vld [vmem:[#allocation5 + $0x2f4] sm:$0xf0]  ;;  %v2913_v41 = vld [vmem:[#allocation5 + $0x488] sm:$0xf]  ;;  %v3469_v43 = vld [vmem:[#allocation5 + $0x4b0] sm:$0xf0]  ;;  %v2426_v46 = vor.u32 %v3342_v37, %v2423_v38 }
  0x3e   :  { %1167 = vmatpush.bf16.msrb.mxu0 %v2602_v56  ;;  %v3398_v44 = vld [vmem:[#allocation5 + $0x27c] sm:$0xf]  ;;  %v2651_v45 = vld [vmem:[#allocation5 + $0x2a4] sm:$0xf0]  ;;  %v3381_v48 = vld [vmem:[#allocation5 + $0x1f0] sm:$0xf0]  ;;  %v2690_v50 = vor.u32 %v3408_v39, %v2687_v40  ;;  %v2914_v53 = vor.u32 %v3469_v43, %v2913_v41 }
  0x3f   :  { %1143 = vmatpush.bf16.msrb.mxu1 %v2510_v57  ;;  %v2561_v47 = vld [vmem:[#allocation5 + $0x1c8] sm:$0xf]  ;;  %v3331_v51 = vld [vmem:[#allocation5 + $0x64] sm:$0xf]  ;;  %v2379_v52 = vld [vmem:[#allocation5 + $0x8c] sm:$0xf0]  ;;  %v2654_v54 = vor.u32 %v3398_v44, %v2651_v45 }
  0x40   :  { %1182 = vmatpush.bf16.msrb.mxu2 %v2866_v58  ;;  %1158 = vmatpush.bf16.msrb.mxu3 %v2774_v62  ;;  %v2869_v56 = vld [vmem:[#allocation5 + $0x430] sm:$0xf]  ;;  %v2562_v57 = vor.u32 %v3381_v48, %v2561_v47  ;;  %v3458_v58 = vld [vmem:[#allocation5 + $0x458] sm:$0xf0]  ;;  %v3387_v59 = vld [vmem:[#allocation5 + $0x224] sm:$0xf]  ;;  %v2382_v61 = vor.u32 %v3331_v51, %v2379_v52 }
  0x41   :  { %v2607_v60 = vld [vmem:[#allocation5 + $0x24c] sm:$0xf0]  ;;  %v3370_v63 = vld [vmem:[#allocation5 + $0x198] sm:$0xf0]  ;;  %v3320_v0 = vld [vmem:[#allocation5 + $0xc] sm:$0xf]  ;;  %v2870_v2 = vor.u32 %v3458_v58, %v2869_v56 }
  0x42   :  { %1168 = vmatpush.bf16.msrb.mxu0 %v2558_v4  ;;  %v2517_v62 = vld [vmem:[#allocation5 + $0x170] sm:$0xf]  ;;  %v2335_v1 = vld [vmem:[#allocation5 + $0x34] sm:$0xf0]  ;;  %v2610_v3 = vor.u32 %v3387_v59, %v2607_v60  ;;  %v3447_v8 = vld [vmem:[#allocation5 + $0x400] sm:$0xf0] }
  0x43   :  { %1144 = vmatpush.bf16.msrb.mxu1 %v2466_v5  ;;  %v2825_v4 = vld [vmem:[#allocation5 + $0x3d8] sm:$0xf]  ;;  %v3464_v5 = vld [vmem:[#allocation5 + $0x48c] sm:$0xf]  ;;  %v2518_v7 = vor.u32 %v3370_v63, %v2517_v62  ;;  %v2338_v11 = vor.u32 %v3320_v0, %v2335_v1  ;;  %v3359_v13 = vld [vmem:[#allocation5 + $0x140] sm:$0xf0] }
  0x44   :  { %1183 = vmatpush.bf16.msrb.mxu2 %v2822_v6  ;;  %1159 = vmatpush.bf16.msrb.mxu3 %v2730_v10  ;;  %v2915_v6 = vld [vmem:[#allocation5 + $0x4b4] sm:$0xf0]  ;;  %v3376_v9 = vld [vmem:[#allocation5 + $0x1cc] sm:$0xf]  ;;  %v2826_v15 = vor.u32 %v3447_v8, %v2825_v4  ;;  %v2781_v17 = vld [vmem:[#allocation5 + $0x380] sm:$0xf] }
  0x45   :  { %v2563_v10 = vld [vmem:[#allocation5 + $0x1f4] sm:$0xf0]  ;;  %v2918_v14 = vor.u32 %v3464_v5, %v2915_v6  ;;  %v3453_v18 = vld [vmem:[#allocation5 + $0x434] sm:$0xf]  ;;  %v3436_v21 = vld [vmem:[#allocation5 + $0x3a8] sm:$0xf0] }
  0x46   :  { %1169 = vmatpush.bf16.msrb.mxu0 %v2514_v16  ;;  %v2473_v12 = vld [vmem:[#allocation5 + $0x118] sm:$0xf]  ;;  %v2566_v16 = vor.u32 %v3376_v9, %v2563_v10  ;;  %v3365_v22 = vld [vmem:[#allocation5 + $0x174] sm:$0xf]  ;;  %v2519_v23 = vld [vmem:[#allocation5 + $0x19c] sm:$0xf0]  ;;  %v2782_v27 = vor.u32 %v3436_v21, %v2781_v17 }
  0x47   :  { %1145 = vmatpush.bf16.msrb.mxu1 %v2422_v19  ;;  %v2871_v19 = vld [vmem:[#allocation5 + $0x45c] sm:$0xf0]  ;;  %v3348_v25 = vld [vmem:[#allocation5 + $0xe8] sm:$0xf0]  ;;  %v3442_v30 = vld [vmem:[#allocation5 + $0x3dc] sm:$0xf] }
  0x48   :  { %1184 = vmatpush.bf16.msrb.mxu2 %v2778_v20  ;;  %1160 = vmatpush.bf16.msrb.mxu3 %v2686_v24  ;;  %v2474_v20 = vor.u32 %v3359_v13, %v2473_v12  ;;  %v2429_v24 = vld [vmem:[#allocation5 + $0xc0] sm:$0xf]  ;;  %v2874_v26 = vor.u32 %v3453_v18, %v2871_v19  ;;  %v2827_v31 = vld [vmem:[#allocation5 + $0x404] sm:$0xf0]  ;;  %v3337_v38 = vld [vmem:[#allocation5 + $0x90] sm:$0xf0] }
  0x49   :  { %v2430_v32 = vor.u32 %v3348_v25, %v2429_v24  ;;  %v2475_v36 = vld [vmem:[#allocation5 + $0x144] sm:$0xf0]  ;;  %v2830_v39 = vor.u32 %v3442_v30, %v2827_v31  ;;  %v2693_v43 = vld [vmem:[#allocation5 + $0x2d0] sm:$0xf]  ;;  %v3431_v44 = vld [vmem:[#allocation5 + $0x384] sm:$0xf] }
  0x4a   :  { %1170 = vmatpush.bf16.msrb.mxu0 %v2470_v29  ;;  %v2737_v29 = vld [vmem:[#allocation5 + $0x328] sm:$0xf]  ;;  %v2783_v45 = vld [vmem:[#allocation5 + $0x3ac] sm:$0xf0]  ;;  %v3414_v47 = vld [vmem:[#allocation5 + $0x2f8] sm:$0xf0] }
  0x4b   :  { %1146 = vmatpush.bf16.msrb.mxu1 %v2378_v34  ;;  %2941 = vmatmul.msk.bf16.vlgmr.msrb.gmra.mxu3 %vm1084_vm0, %v3794_v33  ;;  %v3425_v34 = vld [vmem:[#allocation5 + $0x350] sm:$0xf0]  ;;  %v2385_v37 = vld [vmem:[#allocation5 + $0x68] sm:$0xf]  ;;  %v3343_v48 = vld [vmem:[#allocation5 + $0xc4] sm:$0xf] }
  0x4c   :  { %1192 = vmatpush.bf16.msra.mxu3 %v2650_v28  ;;  %1185 = vmatpush.bf16.msrb.mxu2 %v2734_v35  ;;  %v2522_v28 = vor.u32 %v3365_v22, %v2519_v23  ;;  %v3354_v35 = vld [vmem:[#allocation5 + $0x11c] sm:$0xf]  ;;  %v2738_v40 = vor.u32 %v3425_v34, %v2737_v29  ;;  %v2657_v51 = vld [vmem:[#allocation5 + $0x280] sm:$0xf]  ;;  %v3404_v52 = vld [vmem:[#allocation5 + $0x2a8] sm:$0xf0] }
  0x4d   :  { %v2478_v41 = vor.u32 %v3354_v35, %v2475_v36  ;;  %v3470_v56 = vld [vmem:[#allocation5 + $0x4b8] sm:$0xf0]  ;;  %v3420_v59 = vld [vmem:[#allocation5 + $0x32c] sm:$0xf]  ;;  %v2739_v60 = vld [vmem:[#allocation5 + $0x354] sm:$0xf0]  ;;  %v2658_v62 = vor.u32 %v3404_v52, %v2657_v51 }
  0x4e   :  { %1171 = vmatpush.bf16.msrb.mxu0 %v2426_v46  ;;  %v2386_v46 = vor.u32 %v3337_v38, %v2385_v37  ;;  %v3332_v63 = vld [vmem:[#allocation5 + $0x6c] sm:$0xf]  ;;  %v2387_v0 = vld [vmem:[#allocation5 + $0x94] sm:$0xf0]  ;;  %v2742_v4 = vor.u32 %v3420_v59, %v2739_v60  ;;  %v3459_v6 = vld [vmem:[#allocation5 + $0x460] sm:$0xf0] }
  0x4f   :  { %1147 = vmatpush.bf16.msrb.mxu1 %v2334_v49  ;;  %v2431_v49 = vld [vmem:[#allocation5 + $0xec] sm:$0xf0]  ;;  %v2877_v5 = vld [vmem:[#allocation5 + $0x438] sm:$0xf]  ;;  %v2390_v8 = vor.u32 %v3332_v63, %v2387_v0  ;;  %v2343_v9 = vld [vmem:[#allocation5 + $0x3c] sm:$0xf0] }
  0x50   :  { %1193 = vmatpush.bf16.msra.mxu3 %v2606_v42  ;;  %1186 = vmatpush.bf16.msrb.mxu2 %v2690_v50  ;;  %v2341_v42 = vld [vmem:[#allocation5 + $0x10] sm:$0xf]  ;;  %v3326_v50 = vld [vmem:[#allocation5 + $0x38] sm:$0xf0]  ;;  %v2434_v58 = vor.u32 %v3343_v48, %v2431_v49  ;;  %v3409_v10 = vld [vmem:[#allocation5 + $0x2d4] sm:$0xf] }
  0x51   :  { %v2569_v13 = vld [vmem:[#allocation5 + $0x1d0] sm:$0xf]  ;;  %v3382_v17 = vld [vmem:[#allocation5 + $0x1f8] sm:$0xf0]  ;;  %v3465_v18 = vld [vmem:[#allocation5 + $0x494] sm:$0xf] }
  0x52   :  { %1148 = vmatmul.bf16.vlgmr.msrb.gmra.mxu1 %v3800_v55  ;;  %1172 = vmatpush.bf16.msrb.mxu0 %v2382_v61  ;;  %v2342_v61 = vor.u32 %v3326_v50, %v2341_v42  ;;  %v2923_v19 = vld [vmem:[#allocation5 + $0x4bc] sm:$0xf0]  ;;  %v3448_v22 = vld [vmem:[#allocation5 + $0x408] sm:$0xf0]  ;;  %v2570_v25 = vor.u32 %v3382_v17, %v2569_v13  ;;  %v2615_v29 = vld [vmem:[#allocation5 + $0x254] sm:$0xf0] }
  0x53   :  { %1207 = vmatpush.bf16.msra.mxu1 %v2914_v53  ;;  %2942 = vmatmul.msk.bf16.vlgmr.msrb.gmra.mxu2 %vm1084_vm0, %v3794_v33  ;;  %v2786_v53 = vor.u32 %v3431_v44, %v2783_v45  ;;  %v2833_v21 = vld [vmem:[#allocation5 + $0x3e0] sm:$0xf]  ;;  %v3371_v31 = vld [vmem:[#allocation5 + $0x1a0] sm:$0xf0]  ;;  %v2879_v34 = vld [vmem:[#allocation5 + $0x464] sm:$0xf0] }
  0x54   :  { %1218 = vmatpush.bf16.msra.mxu2 %v2654_v54  ;;  %1194 = vmatpush.bf16.msra.mxu3 %v2562_v57  ;;  %v2921_v54 = vld [vmem:[#allocation5 + $0x490] sm:$0xf]  ;;  %v2694_v57 = vor.u32 %v3414_v47, %v2693_v43  ;;  %v2834_v30 = vor.u32 %v3448_v22, %v2833_v21  ;;  %v2789_v35 = vld [vmem:[#allocation5 + $0x388] sm:$0xf]  ;;  %v3437_v36 = vld [vmem:[#allocation5 + $0x3b0] sm:$0xf0] }
  0x55   :  { %v2922_v1 = vor.u32 %v3470_v56, %v2921_v54  ;;  %v2481_v38 = vld [vmem:[#allocation5 + $0x120] sm:$0xf]  ;;  %v3377_v42 = vld [vmem:[#allocation5 + $0x1d4] sm:$0xf]  ;;  %v2790_v44 = vor.u32 %v3437_v36, %v2789_v35  ;;  %v3443_v45 = vld [vmem:[#allocation5 + $0x3e4] sm:$0xf] }
  0x56   :  { %1173 = vmatpush.bf16.msrb.mxu0 %v2338_v11  ;;  %v2695_v11 = vld [vmem:[#allocation5 + $0x2fc] sm:$0xf0]  ;;  %v2745_v47 = vld [vmem:[#allocation5 + $0x330] sm:$0xf]  ;;  %v3426_v48 = vld [vmem:[#allocation5 + $0x358] sm:$0xf0] }
  0x57   :  { %1208 = vmatpush.bf16.msra.mxu1 %v2870_v2  ;;  %v2613_v2 = vld [vmem:[#allocation5 + $0x228] sm:$0xf]  ;;  %v2571_v43 = vld [vmem:[#allocation5 + $0x1fc] sm:$0xf0]  ;;  %v2746_v56 = vor.u32 %v3426_v48, %v2745_v47  ;;  %v2791_v59 = vld [vmem:[#allocation5 + $0x3b4] sm:$0xf0] }
  0x58   :  { %1219 = vmatpush.bf16.msra.mxu2 %v2610_v3  ;;  %1195 = vmatpush.bf16.msra.mxu3 %v2518_v7  ;;  %v3393_v3 = vld [vmem:[#allocation5 + $0x250] sm:$0xf0]  ;;  %v2574_v49 = vor.u32 %v3377_v42, %v2571_v43  ;;  %v2437_v52 = vld [vmem:[#allocation5 + $0xc8] sm:$0xf]  ;;  %v2701_v60 = vld [vmem:[#allocation5 + $0x2d8] sm:$0xf] }
  0x59   :  { %1174 = vmatmul.bf16.vlgmr.msrb.gmra.mxu0 %v3800_v55  ;;  %v3321_v7 = vld [vmem:[#allocation5 + $0x14] sm:$0xf]  ;;  %v2614_v12 = vor.u32 %v3393_v3, %v2613_v2  ;;  %v2527_v54 = vld [vmem:[#allocation5 + $0x1a4] sm:$0xf0]  ;;  %v2393_v3 = vld [vmem:[#allocation5 + $0x70] sm:$0xf] }
  0x5a   :  { %1233 = vmatpush.bf16.msra.mxu0 %v2918_v14  ;;  %v3399_v14 = vld [vmem:[#allocation5 + $0x284] sm:$0xf]  ;;  %v2346_v23 = vor.u32 %v3321_v7, %v2343_v9  ;;  %v2665_v63 = vld [vmem:[#allocation5 + $0x288] sm:$0xf]  ;;  %v3405_v0 = vld [vmem:[#allocation5 + $0x2b0] sm:$0xf0] }
  0x5b   :  { %1209 = vmatpush.bf16.msra.mxu1 %v2826_v15  ;;  %v2659_v15 = vld [vmem:[#allocation5 + $0x2ac] sm:$0xf0]  ;;  %v3338_v7 = vld [vmem:[#allocation5 + $0x98] sm:$0xf0]  ;;  %v2747_v9 = vld [vmem:[#allocation5 + $0x35c] sm:$0xf0] }
  0x5c   :  { %1220 = vmatpush.bf16.msra.mxu2 %v2566_v16  ;;  %1196 = vmatpush.bf16.msra.mxu3 %v2474_v20  ;;  %v2878_v16 = vor.u32 %v3459_v6, %v2877_v5  ;;  %v2698_v20 = vor.u32 %v3409_v10, %v2695_v11  ;;  %v2662_v24 = vor.u32 %v3399_v14, %v2659_v15  ;;  %v2483_v5 = vld [vmem:[#allocation5 + $0x14c] sm:$0xf0]  ;;  %v3394_v13 = vld [vmem:[#allocation5 + $0x258] sm:$0xf0]  ;;  %v2349_v14 = vld [vmem:[#allocation5 + $0x18] sm:$0xf] }
  0x5d   :  { %v2666_v10 = vor.u32 %v3405_v0, %v2665_v63  ;;  %v2394_v15 = vor.u32 %v3338_v7, %v2393_v3  ;;  %v3327_v17 = vld [vmem:[#allocation5 + $0x40] sm:$0xf0]  ;;  %v2703_v21 = vld [vmem:[#allocation5 + $0x304] sm:$0xf0]  ;;  %v2929_v22 = vld [vmem:[#allocation5 + $0x498] sm:$0xf] }
  0x5e   :  { %1234 = vmatpush.bf16.msra.mxu0 %v2874_v26  ;;  %v2926_v26 = vor.u32 %v3465_v18, %v2923_v19  ;;  %v3344_v18 = vld [vmem:[#allocation5 + $0xcc] sm:$0xf]  ;;  %v2439_v19 = vld [vmem:[#allocation5 + $0xf4] sm:$0xf0]  ;;  %v2533_v43 = vld [vmem:[#allocation5 + $0x180] sm:$0xf] }
  0x5f   :  { %1210 = vmatpush.bf16.msra.mxu1 %v2782_v27  ;;  %v2525_v27 = vld [vmem:[#allocation5 + $0x178] sm:$0xf]  ;;  %v2797_v63 = vld [vmem:[#allocation5 + $0x390] sm:$0xf]  ;;  %v3455_v0 = vld [vmem:[#allocation5 + $0x444] sm:$0xf] }
  0x60   :  { %1221 = vmatpush.bf16.msra.mxu2 %v2522_v28  ;;  %1197 = vmatpush.bf16.msra.mxu3 %v2430_v32  ;;  %v3388_v28 = vld [vmem:[#allocation5 + $0x22c] sm:$0xf]  ;;  %v3454_v32 = vld [vmem:[#allocation5 + $0x43c] sm:$0xf]  ;;  %s3738_s28 = smov [#allocation11]   ;;  %s2311_s9 = sshll.u32 %s3857_s7, 4  ;;  %s2312_s9 = int_to_ptr.hbm [resolvable:$true] %s2311_s9 }
  0x61   :  { %v2618_v37 = vor.u32 %v3388_v28, %v2615_v29  ;;  %v2577_v28 = vld [vmem:[#allocation5 + $0x1d8] sm:$0xf]  ;;  %v3383_v29 = vld [vmem:[#allocation5 + $0x200] sm:$0xf0]  ;;  %v3438_v3 = vld [vmem:[#allocation5 + $0x3b8] sm:$0xf0] }
  0x62   :  { %1235 = vmatpush.bf16.msra.mxu0 %v2830_v39  ;;  %v2526_v39 = vor.u32 %v3371_v31, %v2525_v27  ;;  %v2442_v27 = vor.u32 %v3344_v18, %v2439_v19  ;;  %v3350_v7 = vld [vmem:[#allocation5 + $0xf8] sm:$0xf0]  ;;  %v2401_v18 = vld [vmem:[#allocation5 + $0x78] sm:$0xf]  ;;  %v3339_v19 = vld [vmem:[#allocation5 + $0xa0] sm:$0xf0] }
  0x63   :  { %1211 = vmatpush.bf16.msra.mxu1 %v2738_v40  ;;  %v2882_v40 = vor.u32 %v3454_v32, %v2879_v34  ;;  %v3333_v32 = vld [vmem:[#allocation5 + $0x74] sm:$0xf]  ;;  %v2395_v34 = vld [vmem:[#allocation5 + $0x9c] sm:$0xf0]  ;;  %s2309_s29 = sshll.u32 %s3738_s28, 4  ;;  %s2310_s29 = int_to_ptr.vmem [resolvable:$true] %s2309_s29 }
  0x64   :  { %1222 = vmatpush.bf16.msra.mxu2 %v2478_v41  ;;  %1198 = vmatpush.bf16.msra.mxu3 %v2386_v46  ;;  %v3360_v41 = vld [vmem:[#allocation5 + $0x148] sm:$0xf0]  ;;  %v2835_v46 = vld [vmem:[#allocation5 + $0x40c] sm:$0xf0]  ;;  %v2398_v42 = vor.u32 %v3333_v32, %v2395_v34  ;;  %v3406_v34 = vld [vmem:[#allocation5 + $0x2b8] sm:$0xf0] }
  0x65   :  { %v2482_v50 = vor.u32 %v3360_v41, %v2481_v38  ;;  %v2838_v51 = vor.u32 %v3443_v45, %v2835_v46  ;;  %v2578_v38 = vor.u32 %v3383_v29, %v2577_v28  ;;  %v2623_v41 = vld [vmem:[#allocation5 + $0x25c] sm:$0xf0]  ;;  %v3322_v45 = vld [vmem:[#allocation5 + $0x1c] sm:$0xf]  ;;  %v2351_v46 = vld [vmem:[#allocation5 + $0x44] sm:$0xf0] }
  0x66   :  { %1236 = vmatpush.bf16.msra.mxu0 %v2786_v53  ;;  %v3366_v53 = vld [vmem:[#allocation5 + $0x17c] sm:$0xf]  ;;  %v3416_v28 = vld [vmem:[#allocation5 + $0x308] sm:$0xf0]  ;;  %v3345_v29 = vld [vmem:[#allocation5 + $0xd4] sm:$0xf] }
  0x67   :  { %1212 = vmatpush.bf16.msra.mxu1 %v2694_v57  ;;  %v3349_v57 = vld [vmem:[#allocation5 + $0xf0] sm:$0xf0]  ;;  %v2673_v32 = vld [vmem:[#allocation5 + $0x290] sm:$0xf] }
  0x68   :  { %1223 = vmatpush.bf16.msra.mxu2 %v2434_v58  ;;  %1199 = vmatpush.bf16.msra.mxu3 %v2342_v61  ;;  %v3432_v58 = vld [vmem:[#allocation5 + $0x38c] sm:$0xf]  ;;  %v3415_v61 = vld [vmem:[#allocation5 + $0x300] sm:$0xf0] }
  0x69   :  { %v2794_v2 = vor.u32 %v3432_v58, %v2791_v59  ;;  %v2702_v6 = vor.u32 %v3415_v61, %v2701_v60  ;;  %v2489_v58 = vld [vmem:[#allocation5 + $0x128] sm:$0xf]  ;;  %v3361_v59 = vld [vmem:[#allocation5 + $0x150] sm:$0xf0] }
  0x6a   :  { %1237 = vmatpush.bf16.msra.mxu0 %v2742_v4  ;;  %2943 = vmatmul.msk.bf16.vlgmr.msra.gmra.mxu1 %vm1084_vm0, %v3794_v33  ;;  %v3355_v4 = vld [vmem:[#allocation5 + $0x124] sm:$0xf] }
  0x6b   :  { %1244 = vmatpush.bf16.msrb.mxu1 %v2658_v62  ;;  %1200 = vmatmul.bf16.vlgmr.msra.gmra.mxu3 %v3800_v55  ;;  %v2530_v62 = vor.u32 %v3366_v53, %v2527_v54  ;;  %v2486_v11 = vor.u32 %v3355_v4, %v2483_v5  ;;  %v3449_v53 = vld [vmem:[#allocation5 + $0x410] sm:$0xf0]  ;;  %v3378_v54 = vld [vmem:[#allocation5 + $0x1dc] sm:$0xf]  ;;  %v3367_v4 = vld [vmem:[#allocation5 + $0x184] sm:$0xf] }
  0x6c   :  { %1259 = vmatpush.bf16.msrb.mxu3 %v2922_v1  ;;  %1224 = vmatpush.bf16.msra.mxu2 %v2390_v8  ;;  %v2438_v1 = vor.u32 %v3349_v57, %v2437_v52  ;;  %v3421_v8 = vld [vmem:[#allocation5 + $0x334] sm:$0xf]  ;;  %v2354_v57 = vor.u32 %v3322_v45, %v2351_v46  ;;  %v2535_v5 = vld [vmem:[#allocation5 + $0x1ac] sm:$0xf0]  ;;  %v2403_v45 = vld [vmem:[#allocation5 + $0xa4] sm:$0xf0] }
  0x6e   :  { %1238 = vmatpush.bf16.msra.mxu0 %v2698_v20  ;;  %v3410_v20 = vld [vmem:[#allocation5 + $0x2dc] sm:$0xf] }
  0x6f   :  { %1245 = vmatpush.bf16.msrb.mxu1 %v2614_v12  ;;  %v2621_v12 = vld [vmem:[#allocation5 + $0x230] sm:$0xf]  ;;  %v2706_v31 = vor.u32 %v3410_v20, %v2703_v21 }
  0x70   :  { %1260 = vmatpush.bf16.msrb.mxu3 %v2878_v16  ;;  %1225 = vmatpush.bf16.msra.mxu2 %v2346_v23  ;;  %v2750_v16 = vor.u32 %v3421_v8, %v2747_v9  ;;  %v2622_v23 = vor.u32 %v3394_v13, %v2621_v12  ;;  %v2798_v9 = vor.u32 %v3438_v3, %v2797_v63  ;;  %v3444_v12 = vld [vmem:[#allocation5 + $0x3ec] sm:$0xf]  ;;  %v2843_v13 = vld [vmem:[#allocation5 + $0x414] sm:$0xf0]  ;;  %v3450_v63 = vld [vmem:[#allocation5 + $0x418] sm:$0xf0] }
  0x71   :  { %2944 = vmatmul.msk.bf16.vlgmr.msra.gmra.mxu0 %vm1084_vm0, %v3794_v33  ;;  %v2846_v20 = vor.u32 %v3444_v12, %v2843_v13  ;;  %v3487_v12 = vld [vmem:[#allocation8 + $0x70] sm:$0xff] }
  0x72   :  { %1270 = vmatpush.bf16.msrb.mxu0 %v2662_v24  ;;  %v3471_v24 = vld [vmem:[#allocation5 + $0x4c0] sm:$0xf0] }
  0x73   :  { %1246 = vmatpush.bf16.msrb.mxu1 %v2570_v25  ;;  %1226 = vmatmul.bf16.vlgmr.msra.gmra.mxu2 %v3800_v55  ;;  %v3400_v25 = vld [vmem:[#allocation5 + $0x28c] sm:$0xf]  ;;  %v2930_v35 = vor.u32 %v3471_v24, %v2929_v22  ;;  %v2709_v24 = vld [vmem:[#allocation5 + $0x2e0] sm:$0xf] }
  0x74   :  { %1285 = vmatpush.bf16.msrb.mxu2 %v2926_v26  ;;  %1261 = vmatpush.bf16.msrb.mxu3 %v2834_v30  ;;  %v2667_v26 = vld [vmem:[#allocation5 + $0x2b4] sm:$0xf0]  ;;  %v2350_v30 = vor.u32 %v3327_v17, %v2349_v14 }
  0x75   :  { %v2670_v36 = vor.u32 %v3400_v25, %v2667_v26  ;;  %v2491_v17 = vld [vmem:[#allocation5 + $0x154] sm:$0xf0]  ;;  %v3433_v25 = vld [vmem:[#allocation5 + $0x394] sm:$0xf]  ;;  %v2799_v26 = vld [vmem:[#allocation5 + $0x3bc] sm:$0xf0] }
  0x76   :  { %1271 = vmatpush.bf16.msrb.mxu0 %v2618_v37  ;;  %v2885_v37 = vld [vmem:[#allocation5 + $0x440] sm:$0xf] }
  0x77   :  { %1247 = vmatpush.bf16.msrb.mxu1 %v2526_v39  ;;  %v3460_v39 = vld [vmem:[#allocation5 + $0x468] sm:$0xf0] }
  0x78   :  { %1286 = vmatpush.bf16.msrb.mxu2 %v2882_v40  ;;  %1262 = vmatpush.bf16.msrb.mxu3 %v2790_v44  ;;  %v3389_v40 = vld [vmem:[#allocation5 + $0x234] sm:$0xf]  ;;  %v3372_v44 = vld [vmem:[#allocation5 + $0x1a8] sm:$0xf0]  ;;  %v2886_v47 = vor.u32 %v3460_v39, %v2885_v37  ;;  %v2802_v37 = vor.u32 %v3433_v25, %v2799_v26  ;;  %v3477_v26 = vld [vmem:[#allocation8 + $0x20] sm:$0xff] }
  0x79   :  { %v2626_v48 = vor.u32 %v3389_v40, %v2623_v41  ;;  %v2534_v52 = vor.u32 %v3372_v44, %v2533_v43  ;;  %v3422_v40 = vld [vmem:[#allocation5 + $0x33c] sm:$0xf]  ;;  %v2755_v41 = vld [vmem:[#allocation5 + $0x364] sm:$0xf0]  ;;  %v2674_v43 = vor.u32 %v3406_v34, %v2673_v32  ;;  %v3417_v25 = vld [vmem:[#allocation5 + $0x310] sm:$0xf0] }
  0x7a   :  { %1272 = vmatpush.bf16.msrb.mxu0 %v2574_v49  ;;  %v2841_v49 = vld [vmem:[#allocation5 + $0x3e8] sm:$0xf]  ;;  %v3334_v44 = vld [vmem:[#allocation5 + $0x7c] sm:$0xf]  ;;  %v3496_v32 = vld [vmem:[#allocation8 + $0xb8] sm:$0xff] }
  0x7b   :  { %1248 = vmatpush.bf16.msrb.mxu1 %v2482_v50  ;;  %v3466_v50 = vld [vmem:[#allocation5 + $0x49c] sm:$0xf]  ;;  %v2842_v61 = vor.u32 %v3449_v53, %v2841_v49  ;;  %v2893_v49 = vld [vmem:[#allocation5 + $0x448] sm:$0xf]  ;;  %v3411_v53 = vld [vmem:[#allocation5 + $0x2e4] sm:$0xf] }
  0x7c   :  { %1287 = vmatpush.bf16.msrb.mxu2 %v2838_v51  ;;  %1263 = vmatpush.bf16.msrb.mxu3 %v2746_v56  ;;  %v2931_v51 = vld [vmem:[#allocation5 + $0x4c4] sm:$0xf0]  ;;  %v3476_v34 = vld [vmem:[#allocation8 + $0x18] sm:$0xff] }
  0x7d   :  { %v2579_v56 = vld [vmem:[#allocation5 + $0x204] sm:$0xf0]  ;;  %v2934_v60 = vor.u32 %v3466_v50, %v2931_v51  ;;  %v3461_v50 = vld [vmem:[#allocation5 + $0x470] sm:$0xf0]  ;;  %v2758_v51 = vor.u32 %v3422_v40, %v2755_v41  ;;  %v3475_v40 = vld [vmem:[#allocation8 + $0x10] sm:$0xff] }
  0x7e   :  { %1273 = vmatpush.bf16.msrb.mxu0 %v2530_v62  ;;  %v2582_v62 = vor.u32 %v3378_v54, %v2579_v56  ;;  %v2711_v54 = vld [vmem:[#allocation5 + $0x30c] sm:$0xf0] }
  0x7f   :  { %1249 = vmatpush.bf16.msrb.mxu1 %v2438_v1  ;;  %v2887_v1 = vld [vmem:[#allocation5 + $0x46c] sm:$0xf0] }
  0x80   :  { %1288 = vmatpush.bf16.msrb.mxu2 %v2794_v2  ;;  %1264 = vmatpush.bf16.msrb.mxu3 %v2702_v6  ;;  %v2490_v2 = vor.u32 %v3361_v59, %v2489_v58  ;;  %v2445_v6 = vld [vmem:[#allocation5 + $0xd0] sm:$0xf]  ;;  %v2890_v8 = vor.u32 %v3455_v0, %v2887_v1  ;;  %v2894_v59 = vor.u32 %v3461_v50, %v2893_v49  ;;  %v3482_v49 = vld [vmem:[#allocation8 + $0x48] sm:$0xff]  ;;  %v3493_v50 = vld [vmem:[#allocation8 + $0xa0] sm:$0xff] }
  0x81   :  { %v2446_v14 = vor.u32 %v3350_v7, %v2445_v6  ;;  %v2359_v58 = vld [vmem:[#allocation5 + $0x4c] sm:$0xf0]  ;;  %v2714_v0 = vor.u32 %v3411_v53, %v2711_v54  ;;  %v2541_v6 = vld [vmem:[#allocation5 + $0x188] sm:$0xf]  ;;  %v3373_v7 = vld [vmem:[#allocation5 + $0x1b0] sm:$0xf0] }
  0x82   :  { %1274 = vmatpush.bf16.msrb.mxu0 %v2486_v11  ;;  %v2753_v11 = vld [vmem:[#allocation5 + $0x338] sm:$0xf]  ;;  %v3502_v53 = vld [vmem:[#allocation8 + $0xe8] sm:$0xff]  ;;  %v3481_v54 = vld [vmem:[#allocation8 + $0x40] sm:$0xff] }
  0x83   :  { %1250 = vmatpush.bf16.msrb.mxu1 %v2394_v15  ;;  %2945 = vmatmul.msk.bf16.vlgmr.msrb.gmra.mxu3 %vm1084_vm0, %v3794_v33  ;;  %v3427_v15 = vld [vmem:[#allocation5 + $0x360] sm:$0xf0] }
  0x84   :  { %1296 = vmatpush.bf16.msra.mxu3 %v2666_v10  ;;  %1289 = vmatpush.bf16.msrb.mxu2 %v2750_v16  ;;  %v2538_v10 = vor.u32 %v3367_v4, %v2535_v5  ;;  %v3356_v16 = vld [vmem:[#allocation5 + $0x12c] sm:$0xf]  ;;  %v2754_v21 = vor.u32 %v3427_v15, %v2753_v11  ;;  %v3488_v4 = vld [vmem:[#allocation8 + $0x78] sm:$0xff]  ;;  %v2542_v11 = vor.u32 %v3373_v7, %v2541_v6  ;;  %v3362_v15 = vld [vmem:[#allocation5 + $0x158] sm:$0xf0] }
  0x85   :  { %v2494_v22 = vor.u32 %v3356_v16, %v2491_v17  ;;  %v2761_v16 = vld [vmem:[#allocation5 + $0x340] sm:$0xf]  ;;  %v3428_v17 = vld [vmem:[#allocation5 + $0x368] sm:$0xf0]  ;;  %v3500_v7 = vld [vmem:[#allocation8 + $0xd8] sm:$0xff] }
  0x86   :  { %1275 = vmatpush.bf16.msrb.mxu0 %v2442_v27  ;;  %v2402_v27 = vor.u32 %v3339_v19, %v2401_v18  ;;  %v3478_v18 = vld [vmem:[#allocation8 + $0x28] sm:$0xff] }
  0x87   :  { %1251 = vmatpush.bf16.msrb.mxu1 %v2350_v30  ;;  %v2447_v30 = vld [vmem:[#allocation5 + $0xfc] sm:$0xf0] }
  0x88   :  { %1297 = vmatpush.bf16.msra.mxu3 %v2622_v23  ;;  %1290 = vmatpush.bf16.msrb.mxu2 %v2706_v31  ;;  %v2357_v23 = vld [vmem:[#allocation5 + $0x20] sm:$0xf]  ;;  %v3328_v31 = vld [vmem:[#allocation5 + $0x48] sm:$0xf0]  ;;  %v2450_v39 = vor.u32 %v3345_v29, %v2447_v30 }
  0x89   :  { %v2409_v30 = vld [vmem:[#allocation5 + $0x80] sm:$0xf] }
  0x8a   :  { %1252 = vmatmul.bf16.vlgmr.msrb.gmra.mxu1 %v3800_v55  ;;  %1276 = vmatpush.bf16.msrb.mxu0 %v2398_v42  ;;  %v2358_v42 = vor.u32 %v3328_v31, %v2357_v23  ;;  %v3351_v23 = vld [vmem:[#allocation5 + $0x100] sm:$0xf0]  ;;  %v3340_v31 = vld [vmem:[#allocation5 + $0xa8] sm:$0xf0] }
  0x8b   :  { %1311 = vmatpush.bf16.msra.mxu1 %v2930_v35  ;;  %2946 = vmatmul.msk.bf16.vlgmr.msrb.gmra.mxu2 %vm1084_vm0, %v3794_v33  ;;  %v2937_v35 = vld [vmem:[#allocation5 + $0x4a0] sm:$0xf] }
  0x8c   :  { %1322 = vmatpush.bf16.msra.mxu2 %v2670_v36  ;;  %1298 = vmatpush.bf16.msra.mxu3 %v2578_v38  ;;  %v3472_v36 = vld [vmem:[#allocation5 + $0x4c8] sm:$0xf0]  ;;  %v2710_v38 = vor.u32 %v3416_v28, %v2709_v24  ;;  %v2717_v24 = vld [vmem:[#allocation5 + $0x2e8] sm:$0xf]  ;;  %v3485_v28 = vld [vmem:[#allocation8 + $0x60] sm:$0xff] }
  0x8d   :  { %v2938_v46 = vor.u32 %v3472_v36, %v2937_v35  ;;  %v2718_v29 = vor.u32 %v3417_v25, %v2717_v24  ;;  %v2410_v35 = vor.u32 %v3340_v31, %v2409_v30  ;;  %v2365_v36 = vld [vmem:[#allocation5 + $0x28] sm:$0xf]  ;;  %v3507_v24 = vld [vmem:[#allocation8 + $0x110] sm:$0xff]  ;;  %v3516_v25 = vld [vmem:[#allocation8 + $0x158] sm:$0xff] }
  0x8e   :  { %1277 = vmatpush.bf16.msrb.mxu0 %v2354_v57  ;;  %v3323_v57 = vld [vmem:[#allocation5 + $0x24] sm:$0xf] }
  0x8f   :  { %1312 = vmatpush.bf16.msra.mxu1 %v2886_v47  ;;  %v2629_v47 = vld [vmem:[#allocation5 + $0x238] sm:$0xf]  ;;  %v2362_v1 = vor.u32 %v3323_v57, %v2359_v58  ;;  %v3506_v31 = vld [vmem:[#allocation8 + $0x108] sm:$0xff] }
  0x90   :  { %1323 = vmatpush.bf16.msra.mxu2 %v2626_v48  ;;  %1299 = vmatpush.bf16.msra.mxu3 %v2534_v52  ;;  %v3395_v48 = vld [vmem:[#allocation5 + $0x260] sm:$0xf0]  ;;  %v2406_v52 = vor.u32 %v3334_v44, %v2403_v45  ;;  %v3492_v58 = vld [vmem:[#allocation8 + $0x98] sm:$0xff] }
  0x91   :  { %1278 = vmatmul.bf16.vlgmr.msrb.gmra.mxu0 %v3800_v55  ;;  %v2630_v56 = vor.u32 %v3395_v48, %v2629_v47  ;;  %v3494_v44 = vld [vmem:[#allocation8 + $0xa8] sm:$0xff]  ;;  %v3830_v47 = vld [vmem:[#allocation7] sm:$0xff] }
  0x92   :  { %1337 = vmatpush.bf16.msra.mxu0 %v2934_v60  ;;  %v2585_v60 = vld [vmem:[#allocation5 + $0x1e0] sm:$0xf]  ;;  %v3503_v48 = vld [vmem:[#allocation8 + $0xf0] sm:$0xff] }
  0x93   :  { %1313 = vmatpush.bf16.msra.mxu1 %v2842_v61  ;;  %v3384_v61 = vld [vmem:[#allocation5 + $0x208] sm:$0xf0] }
  0x94   :  { %1324 = vmatpush.bf16.msra.mxu2 %v2582_v62  ;;  %1300 = vmatpush.bf16.msra.mxu3 %v2490_v2  ;;  %v2849_v62 = vld [vmem:[#allocation5 + $0x3f0] sm:$0xf]  ;;  %v3480_v2 = vld [vmem:[#allocation8 + $0x38] sm:$0xff]  ;;  %v2586_v3 = vor.u32 %v3384_v61, %v2585_v60 }
  0x95   :  { %v2850_v5 = vor.u32 %v3450_v63, %v2849_v62  ;;  %v3511_v61 = vld [vmem:[#allocation8 + $0x130] sm:$0xff]  ;;  %v3520_v62 = vld [vmem:[#allocation8 + $0x178] sm:$0xff]  ;;  %v3501_v63 = vld [vmem:[#allocation8 + $0xe0] sm:$0xff] }
  0x96   :  { %1338 = vmatpush.bf16.msra.mxu0 %v2890_v8  ;;  %v2805_v8 = vld [vmem:[#allocation5 + $0x398] sm:$0xf] }
  0x97   :  { %1314 = vmatpush.bf16.msra.mxu1 %v2798_v9  ;;  %v3439_v9 = vld [vmem:[#allocation5 + $0x3c0] sm:$0xf0] }
  0x98   :  { %1325 = vmatpush.bf16.msra.mxu2 %v2538_v10  ;;  %1301 = vmatpush.bf16.msra.mxu3 %v2446_v14  ;;  %v3479_v10 = vld [vmem:[#allocation8 + $0x30] sm:$0xff]  ;;  %v2806_v13 = vor.u32 %v3439_v9, %v2805_v8 }
  0x99   :  { %v2497_v14 = vld [vmem:[#allocation5 + $0x130] sm:$0xf] }
  0x9a   :  { %1339 = vmatpush.bf16.msra.mxu0 %v2846_v20  ;;  %v2498_v19 = vor.u32 %v3362_v15, %v2497_v14  ;;  %v3486_v20 = vld [vmem:[#allocation8 + $0x68] sm:$0xff]  ;;  %v3509_v14 = vld [vmem:[#allocation8 + $0x120] sm:$0xff]  ;;  %v3499_v15 = vld [vmem:[#allocation8 + $0xd0] sm:$0xff] }
  0x9b   :  { %1315 = vmatpush.bf16.msra.mxu1 %v2754_v21  ;;  %v2762_v21 = vor.u32 %v3428_v17, %v2761_v16  ;;  %v3489_v17 = vld [vmem:[#allocation8 + $0x80] sm:$0xff] }
  0x9c   :  { %1326 = vmatpush.bf16.msra.mxu2 %v2494_v22  ;;  %1302 = vmatpush.bf16.msra.mxu3 %v2402_v27  ;;  %v2453_v22 = vld [vmem:[#allocation5 + $0xd8] sm:$0xf] }
  0x9d   :  { %v2454_v27 = vor.u32 %v3351_v23, %v2453_v22  ;;  %v3498_v22 = vld [vmem:[#allocation8 + $0xc8] sm:$0xff]  ;;  %v3528_v23 = vld [vmem:[#allocation8 + $0x1b8] sm:$0xff] }
  0x9e   :  { %1340 = vmatpush.bf16.msra.mxu0 %v2802_v37  ;;  %v3329_v37 = vld [vmem:[#allocation5 + $0x50] sm:$0xf0] }
  0x9f   :  { %1316 = vmatpush.bf16.msra.mxu1 %v2710_v38  ;;  %v3484_v38 = vld [vmem:[#allocation8 + $0x58] sm:$0xff]  ;;  %v2366_v41 = vor.u32 %v3329_v37, %v2365_v36  ;;  %v3526_v36 = vld [vmem:[#allocation8 + $0x1a8] sm:$0xff] }
  0xa0   :  { %1327 = vmatpush.bf16.msra.mxu2 %v2450_v39  ;;  %1303 = vmatpush.bf16.msra.mxu3 %v2358_v42  ;;  %v3495_v39 = vld [vmem:[#allocation8 + $0xb0] sm:$0xff]  ;;  %v3504_v42 = vld [vmem:[#allocation8 + $0xf8] sm:$0xff] }
  0xa1   :  { %v3536_v37 = vld [vmem:[#allocation8 + $0x1f8] sm:$0xff] }
  0xa2   :  { %2947 = vmatmul.msk.bf16.vlgmr.msra.gmra.mxu1 %vm1084_vm0, %v3794_v33  ;;  %1341 = vmatpush.bf16.msra.mxu0 %v2758_v51  ;;  %v3473_v51 = vld [vmem:[#allocation8] sm:$0xff] }
  0xa3   :  { %1348 = vmatpush.bf16.msrb.mxu1 %v2674_v43  ;;  %1304 = vmatmul.bf16.vlgmr.msra.gmra.mxu3 %v3800_v55  ;;  %v3483_v43 = vld [vmem:[#allocation8 + $0x50] sm:$0xff] }
  0xa4   :  { %1363 = vmatpush.bf16.msrb.mxu3 %v2938_v46  ;;  %1328 = vmatpush.bf16.msra.mxu2 %v2406_v52  ;;  %v3474_v46 = vld [vmem:[#allocation8 + $0x8] sm:$0xff]  ;;  %v3512_v52 = vld [vmem:[#allocation8 + $0x138] sm:$0xff] }
  0xa6   :  { %1342 = vmatpush.bf16.msra.mxu0 %v2714_v0  ;;  %v279_v0 = vperm.slane %v3830_v47, 1 }
  0xa7   :  { %1349 = vmatpush.bf16.msrb.mxu1 %v2630_v56 }
  0xa8   :  { %1364 = vmatpush.bf16.msrb.mxu3 %v2894_v59  ;;  %1329 = vmatpush.bf16.msra.mxu2 %v2362_v1  ;;  %v3491_v1 = vld [vmem:[#allocation8 + $0x90] sm:$0xff] }
  0xa9   :  { %2948 = vmatmul.msk.bf16.vlgmr.msra.gmra.mxu0 %vm1084_vm0, %v3794_v33 }
  0xaa   :  { %2076 = vmatpush.bf16.msrb.mxu0 %v3480_v2 }
  0xab   :  { %1350 = vmatpush.bf16.msrb.mxu1 %v2586_v3  ;;  %1330 = vmatmul.bf16.vlgmr.msra.gmra.mxu2 %v3800_v55  ;;  %v3510_v3 = vld [vmem:[#allocation8 + $0x128] sm:$0xff] }
  0xac   :  { %2089 = vmatpush.bf16.msrb.mxu2 %v3488_v4  ;;  %1365 = vmatpush.bf16.msrb.mxu3 %v2850_v5  ;;  %v3519_v4 = vld [vmem:[#allocation8 + $0x170] sm:$0xff] }
  0xae   :  { %2077 = vmatpush.bf16.msrb.mxu0 %v3479_v10 }
  0xaf   :  { %1351 = vmatpush.bf16.msrb.mxu1 %v2542_v11  ;;  %v1110_v45 = vpop.f32.mrf.mxu1  ;;  %v3490_v11 = vld [vmem:[#allocation8 + $0x88] sm:$0xff] }
  0xb0   :  { %2090 = vmatpush.bf16.msrb.mxu2 %v3487_v12  ;;  %1366 = vmatpush.bf16.msrb.mxu3 %v2806_v13  ;;  %v3518_v12 = vld [vmem:[#allocation8 + $0x168] sm:$0xff] }
  0xb2   :  { %2078 = vmatpush.bf16.msrb.mxu0 %v3478_v18  ;;  %v3517_v18 = vld [vmem:[#allocation8 + $0x160] sm:$0xff] }
  0xb3   :  { %1352 = vmatpush.bf16.msrb.mxu1 %v2498_v19 }
  0xb4   :  { %2091 = vmatpush.bf16.msrb.mxu2 %v3486_v20  ;;  %1367 = vmatpush.bf16.msrb.mxu3 %v2762_v21  ;;  %v3508_v20 = vld [vmem:[#allocation8 + $0x118] sm:$0xff] }
  0xb6   :  { %2079 = vmatpush.bf16.msrb.mxu0 %v3477_v26  ;;  %v1136_v56 = vpop.f32.mrf.mxu3  ;;  %v1097_v57 = vpop.f32.mrf.mxu0  ;;  %v280_v26 = vperm.slane %v3830_v47, 2 }
  0xb7   :  { %1353 = vmatpush.bf16.msrb.mxu1 %v2454_v27  ;;  %v1112_v60 = vpop.f32.mrf.mxu1  ;;  %v3497_v27 = vld [vmem:[#allocation8 + $0xc0] sm:$0xff] }
  0xb8   :  { %2092 = vmatpush.bf16.msrb.mxu2 %v3485_v28  ;;  %1368 = vmatpush.bf16.msrb.mxu3 %v2718_v29  ;;  %v3527_v28 = vld [vmem:[#allocation8 + $0x1b0] sm:$0xff] }
  0xba   :  { %2080 = vmatpush.bf16.msrb.mxu0 %v3476_v34 }
  0xbb   :  { %2949 = vmatmul.msk.bf16.vlgmr.msrb.gmra.mxu3 %vm1084_vm0, %v3794_v33  ;;  %1354 = vmatpush.bf16.msrb.mxu1 %v2410_v35  ;;  %v278_v33 = vperm.slane %v3830_v47, 0 }
  0xbc   :  { %2102 = vmatpush.bf16.msra.mxu3 %v3496_v32  ;;  %2093 = vmatpush.bf16.msrb.mxu2 %v3484_v38  ;;  %v3515_v32 = vld [vmem:[#allocation8 + $0x150] sm:$0xff]  ;;  %v281_v38 = vperm.slane %v3830_v47, 3 }
  0xbd   :  { %v1098_v59 = vadd.f32 %v1097_v57, %v278_v33  ;;  %v3513_v33 = vld [vmem:[#allocation8 + $0x140] sm:$0xff] }
  0xbe   :  { %2081 = vmatpush.bf16.msrb.mxu0 %v3475_v40  ;;  %v1123_v6 = vpop.f32.mrf.mxu2  ;;  %v1138_v9 = vpop.f32.mrf.mxu3  ;;  %v3514_v40 = vld [vmem:[#allocation8 + $0x148] sm:$0xff] }
  0xbf   :  { %1355 = vmatpush.bf16.msrb.mxu1 %v2366_v41  ;;  %v1124_v8 = vadd.f32 %v1123_v6, %v279_v0  ;;  %v1099_v10 = vpop.f32.mrf.mxu0  ;;  %v3521_v0 = vld [vmem:[#allocation8 + $0x180] sm:$0xff]  ;;  %v3542_v9 = vld [vmem:[#allocation8 + $0x228] sm:$0xff] }
  0xc0   :  { %2103 = vmatpush.bf16.msra.mxu3 %v3495_v39  ;;  %2094 = vmatpush.bf16.msrb.mxu2 %v3483_v43  ;;  %v3505_v39 = vld [vmem:[#allocation8 + $0x100] sm:$0xff]  ;;  %v3552_v10 = vld [vmem:[#allocation8 + $0x278] sm:$0xff] }
  0xc1   :  { %v1137_v13 = vadd.f32 %v1136_v56, %v1124_v8  ;;  %v3533_v56 = vld [vmem:[#allocation8 + $0x1e0] sm:$0xff] }
  0xc2   :  { %1356 = vmatmul.bf16.vlgmr.msrb.gmra.mxu1 %v3800_v55  ;;  %2082 = vmatpush.bf16.msrb.mxu0 %v3474_v46  ;;  %v1111_v55 = vadd.f32 %v1110_v45, %v1098_v59  ;;  %v3525_v45 = vld [vmem:[#allocation8 + $0x1a0] sm:$0xff]  ;;  %v3535_v46 = vld [vmem:[#allocation8 + $0x1f0] sm:$0xff] }
  0xc3   :  { %2115 = vmatpush.bf16.msra.mxu1 %v3504_v42  ;;  %v1375_v16 = vmax.f32 %v1137_v13, 0.0  ;;  %v283_v13 = vperm.slane %v3830_v47, 5 }
  0xc4   :  { %2104 = vmatpush.bf16.msra.mxu3 %v3494_v44  ;;  %2095 = vmatpush.bf16.msrb.mxu2 %v3482_v49  ;;  %v1374_v2 = vmax.f32 %v1111_v55, 0.0 }
  0xc5   :  { %v1386_v19 = vpack.c.bf16 %v1375_v16, %v1375_v16  ;;  %v3551_v16 = vld [vmem:[#allocation8 + $0x270] sm:$0xff] }
  0xc6   :  { %2083 = vmatpush.bf16.msrb.mxu0 %v3473_v51  ;;  %v1385_v5 = vpack.c.bf16 %v1374_v2, %v1374_v2  ;;  %v1125_v21 = vpop.f32.mrf.mxu2  ;;  %v282_v2 = vperm.slane %v3830_v47, 4 }
  0xc7   :  { %2116 = vmatpush.bf16.msra.mxu1 %v3503_v48 }
  0xc8   :  { %2105 = vmatpush.bf16.msra.mxu3 %v3493_v50  ;;  %2096 = vmatpush.bf16.msrb.mxu2 %v3481_v54 }
  0xc9   :  { %2084 = vmatmul.bf16.vlgmr.msrb.gmra.mxu0 %v1385_v5 }
  0xca   :  { %2128 = vmatpush.bf16.msra.mxu0 %v3512_v52  ;;  %v3524_v52 = vld [vmem:[#allocation8 + $0x198] sm:$0xff] }
  0xcb   :  { %2117 = vmatpush.bf16.msra.mxu1 %v3502_v53  ;;  %2097 = vmatmul.bf16.vlgmr.msrb.gmra.mxu2 %v1386_v19  ;;  %v3534_v53 = vld [vmem:[#allocation8 + $0x1e8] sm:$0xff] }
  0xcc   :  { %2106 = vmatpush.bf16.msra.mxu3 %v3492_v58  ;;  %2141 = vmatpush.bf16.msra.mxu2 %v3520_v62  ;;  %v3523_v58 = vld [vmem:[#allocation8 + $0x190] sm:$0xff]  ;;  %v3532_v62 = vld [vmem:[#allocation8 + $0x1d8] sm:$0xff] }
  0xce   :  { %2129 = vmatpush.bf16.msra.mxu0 %v3511_v61  ;;  %v1162_v30 = vpop.f32.mrf.mxu3  ;;  %v3522_v61 = vld [vmem:[#allocation8 + $0x188] sm:$0xff] }
  0xcf   :  { %2118 = vmatpush.bf16.msra.mxu1 %v3501_v63  ;;  %v1149_v29 = vpop.f32.mrf.mxu1  ;;  %v3544_v63 = vld [vmem:[#allocation8 + $0x238] sm:$0xff] }
  0xd0   :  { %2107 = vmatpush.bf16.msra.mxu3 %v3491_v1  ;;  %2142 = vmatpush.bf16.msra.mxu2 %v3519_v4  ;;  %v1150_v34 = vadd.f32 %v1149_v29, %v280_v26  ;;  %v3531_v1 = vld [vmem:[#allocation8 + $0x1d0] sm:$0xff]  ;;  %v3530_v4 = vld [vmem:[#allocation8 + $0x1c8] sm:$0xff] }
  0xd1   :  { %v3539_v26 = vld [vmem:[#allocation8 + $0x210] sm:$0xff] }
  0xd2   :  { %2130 = vmatpush.bf16.msra.mxu0 %v3510_v3  ;;  %v1163_v35 = vadd.f32 %v1162_v30, %v1150_v34  ;;  %v3543_v3 = vld [vmem:[#allocation8 + $0x230] sm:$0xff]  ;;  %v3538_v30 = vld [vmem:[#allocation8 + $0x208] sm:$0xff] }
  0xd3   :  { %2119 = vmatpush.bf16.msra.mxu1 %v3500_v7 }
  0xd4   :  { %2108 = vmatpush.bf16.msra.mxu3 %v3490_v11  ;;  %2143 = vmatpush.bf16.msra.mxu2 %v3518_v12  ;;  %v1376_v41 = vmax.f32 %v1163_v35, 0.0  ;;  %v3529_v12 = vld [vmem:[#allocation8 + $0x1c0] sm:$0xff] }
  0xd6   :  { %2131 = vmatpush.bf16.msra.mxu0 %v3509_v14  ;;  %v1387_v42 = vpack.c.bf16 %v1376_v41, %v1376_v41  ;;  %v1175_v43 = vpop.f32.mrf.mxu0  ;;  %v1188_v44 = vpop.f32.mrf.mxu2  ;;  %v3546_v41 = vld [vmem:[#allocation8 + $0x248] sm:$0xff] }
  0xd7   :  { %2120 = vmatpush.bf16.msra.mxu1 %v3499_v15  ;;  %v1176_v48 = vadd.f32 %v1175_v43, %v281_v38  ;;  %v1151_v49 = vpop.f32.mrf.mxu1  ;;  %v1164_v50 = vpop.f32.mrf.mxu3  ;;  %v3541_v15 = vld [vmem:[#allocation8 + $0x220] sm:$0xff] }
  0xd8   :  { %2109 = vmatpush.bf16.msra.mxu3 %v3489_v17  ;;  %2144 = vmatpush.bf16.msra.mxu2 %v3517_v18  ;;  %v3545_v50 = vld [vmem:[#allocation8 + $0x240] sm:$0xff] }
  0xd9   :  { %v1189_v51 = vadd.f32 %v1188_v44, %v1176_v48 }
  0xda   :  { %2132 = vmatpush.bf16.msra.mxu0 %v3508_v20 }
  0xdb   :  { %2121 = vmatpush.bf16.msra.mxu1 %v3498_v22  ;;  %2110 = vmatmul.bf16.vlgmr.msra.gmra.mxu3 %v1387_v42  ;;  %v1377_v54 = vmax.f32 %v1189_v51, 0.0  ;;  %v3540_v22 = vld [vmem:[#allocation8 + $0x218] sm:$0xff] }
  0xdc   :  { %2154 = vmatpush.bf16.msrb.mxu3 %v3528_v23  ;;  %2145 = vmatpush.bf16.msra.mxu2 %v3516_v25  ;;  %v3550_v23 = vld [vmem:[#allocation8 + $0x268] sm:$0xff]  ;;  %v3556_v51 = vld [vmem:[#allocation8 + $0x298] sm:$0xff] }
  0xdd   :  { %v1388_v57 = vpack.c.bf16 %v1377_v54, %v1377_v54 }
  0xde   :  { %2133 = vmatpush.bf16.msra.mxu0 %v3507_v24  ;;  %v1190_v59 = vpop.f32.mrf.mxu2  ;;  %v1177_v60 = vpop.f32.mrf.mxu0 }
  0xdf   :  { %2122 = vmatpush.bf16.msra.mxu1 %v3497_v27  ;;  %v3549_v27 = vld [vmem:[#allocation8 + $0x260] sm:$0xff]  ;;  %v275_v59 = vld [vmem:[#allocation7 + $0x8] sm:$0x7] }
  0xe0   :  { %2155 = vmatpush.bf16.msrb.mxu3 %v3527_v28  ;;  %2146 = vmatpush.bf16.msra.mxu2 %v3515_v32  ;;  %v284_v32 = vperm.slane %v3830_v47, 6  ;;  %v3553_v60 = vld [vmem:[#allocation8 + $0x280] sm:$0xff] }
  0xe2   :  { %2134 = vmatpush.bf16.msra.mxu0 %v3506_v31  ;;  %2123 = vmatmul.bf16.vlgmr.msra.gmra.mxu1 %v1388_v57  ;;  %v3548_v31 = vld [vmem:[#allocation8 + $0x258] sm:$0xff]  ;;  %v3554_v57 = vld [vmem:[#allocation8 + $0x288] sm:$0xff] }
  0xe3   :  { %2167 = vmatpush.bf16.msrb.mxu1 %v3536_v37  ;;  %v3547_v37 = vld [vmem:[#allocation8 + $0x250] sm:$0xff] }
  0xe4   :  { %2156 = vmatpush.bf16.msrb.mxu3 %v3526_v36  ;;  %2147 = vmatpush.bf16.msra.mxu2 %v3514_v40  ;;  %v3537_v36 = vld [vmem:[#allocation8 + $0x200] sm:$0xff]  ;;  %v285_v40 = vperm.slane %v3830_v47, 7 }
  0xe6   :  { %2135 = vmatpush.bf16.msra.mxu0 %v3505_v39 }
  0xe7   :  { %2168 = vmatpush.bf16.msrb.mxu1 %v3535_v46  ;;  %v1214_v55 = vpop.f32.mrf.mxu1 }
  0xe8   :  { %2157 = vmatpush.bf16.msrb.mxu3 %v3525_v45  ;;  %2148 = vmatpush.bf16.msra.mxu2 %v3513_v33 }
  0xea   :  { %2180 = vmatpush.bf16.msrb.mxu0 %v3544_v63 }
  0xeb   :  { %2169 = vmatpush.bf16.msrb.mxu1 %v3534_v53  ;;  %v3555_v53 = vld [vmem:[#allocation8 + $0x290] sm:$0xff] }
  0xec   :  { %2158 = vmatpush.bf16.msrb.mxu3 %v3524_v52  ;;  %2193 = vmatpush.bf16.msrb.mxu2 %v3552_v10 }
  0xee   :  { %v1201_v5 = vpop.f32.mrf.mxu3  ;;  %v1240_v6 = vpop.f32.mrf.mxu0  ;;  %2181 = vmatpush.bf16.msrb.mxu0 %v3543_v3 }
  0xef   :  { %2170 = vmatpush.bf16.msrb.mxu1 %v3533_v56  ;;  %v1202_v7 = vadd.f32 %v1201_v5, %v282_v2  ;;  %v1216_v8 = vpop.f32.mrf.mxu1  ;;  %v287_v2 = vperm.slane %v275_v59, 1 }
  0xf0   :  { %2159 = vmatpush.bf16.msrb.mxu3 %v3523_v58  ;;  %2194 = vmatpush.bf16.msrb.mxu2 %v3551_v16 }
  0xf1   :  { %v1215_v11 = vadd.f32 %v1214_v55, %v1202_v7 }
  0xf2   :  { %2182 = vmatpush.bf16.msrb.mxu0 %v3542_v9 }
  0xf3   :  { %2171 = vmatpush.bf16.msrb.mxu1 %v3532_v62  ;;  %v1378_v14 = vmax.f32 %v1215_v11, 0.0 }
  0xf4   :  { %2160 = vmatpush.bf16.msrb.mxu3 %v3522_v61  ;;  %2195 = vmatpush.bf16.msrb.mxu2 %v3550_v23  ;;  %v286_v61 = vperm.slane %v275_v59, 0  ;;  %v3575_v23 = vld [vmem:[%s3854_s4] ss:$0 sm:$0xff] }
  0xf5   :  { %v1389_v17 = vpack.c.bf16 %v1378_v14, %v1378_v14 }
  0xf6   :  { %v1227_v18 = vpop.f32.mrf.mxu2  ;;  %v1203_v20 = vpop.f32.mrf.mxu3  ;;  %2183 = vmatpush.bf16.msrb.mxu0 %v3541_v15 }
  0xf7   :  { %2172 = vmatpush.bf16.msrb.mxu1 %v3531_v1  ;;  %v1228_v19 = vadd.f32 %v1227_v18, %v283_v13  ;;  %v1242_v21 = vpop.f32.mrf.mxu0  ;;  %2136 = vmatmul.bf16.vlgmr.msra.gmra.mxu0 %v1389_v17  ;;  %v288_v13 = vperm.slane %v275_v59, 2 }
  0xf8   :  { %2161 = vmatpush.bf16.msrb.mxu3 %v3521_v0  ;;  %2196 = vmatpush.bf16.msrb.mxu2 %v3549_v27 }
  0xf9   :  { %v1241_v24 = vadd.f32 %v1240_v6, %v1228_v19 }
  0xfa   :  { %2184 = vmatpush.bf16.msrb.mxu0 %v3540_v22 }
  0xfb   :  { %2173 = vmatpush.bf16.msrb.mxu1 %v3530_v4  ;;  %v1379_v25 = vmax.f32 %v1241_v24, 0.0 }
  0xfc   :  { %2197 = vmatpush.bf16.msrb.mxu2 %v3548_v31  ;;  %2210 = vmatpush.bf16.msra.mxu3 %v3556_v51  ;;  %v3558_v51 = vld [vmem:[#allocation10 + $0x8] sm:$0xff] }
  0xfd   :  { %v1390_v28 = vpack.c.bf16 %v1379_v25, %v1379_v25 }
  0xfe   :  { %v1229_v29 = vpop.f32.mrf.mxu2  ;;  %2185 = vmatpush.bf16.msrb.mxu0 %v3539_v26 }
  0xff   :  { %2174 = vmatpush.bf16.msrb.mxu1 %v3529_v12  ;;  %2149 = vmatmul.bf16.vlgmr.msra.gmra.mxu2 %v1390_v28 }
 0x100   :  { %2198 = vmatpush.bf16.msrb.mxu2 %v3547_v37  ;;  %2211 = vmatpush.bf16.msra.mxu3 %v3555_v53 }
 0x102   :  { %2186 = vmatpush.bf16.msrb.mxu0 %v3538_v30 }
 0x104   :  { %2199 = vmatpush.bf16.msrb.mxu2 %v3546_v41  ;;  %2212 = vmatpush.bf16.msra.mxu3 %v3554_v57 }
 0x106   :  { %v1266_v35 = vpop.f32.mrf.mxu3  ;;  %2187 = vmatpush.bf16.msrb.mxu0 %v3537_v36 }
 0x107   :  { %v1253_v34 = vpop.f32.mrf.mxu1 }
 0x108   :  { %v1254_v38 = vadd.f32 %v1253_v34, %v284_v32  ;;  %2200 = vmatpush.bf16.msrb.mxu2 %v3545_v50  ;;  %2213 = vmatpush.bf16.msra.mxu3 %v3553_v60 }
 0x10a   :  { %v1267_v39 = vadd.f32 %v1266_v35, %v1254_v38 }
 0x10c   :  { %v1380_v42 = vmax.f32 %v1267_v39, 0.0 }
 0x10e   :  { %v1391_v43 = vpack.c.bf16 %v1380_v42, %v1380_v42  ;;  %v1279_v44 = vpop.f32.mrf.mxu0  ;;  %v1292_v45 = vpop.f32.mrf.mxu2  ;;  %v3563_v42 = vld [vmem:[#allocation10 + $0x30] sm:$0xff] }
 0x10f   :  { %v1280_v46 = vadd.f32 %v1279_v44, %v285_v40  ;;  %v1255_v48 = vpop.f32.mrf.mxu1  ;;  %v1268_v49 = vpop.f32.mrf.mxu3  ;;  %v3564_v40 = vld [vmem:[#allocation10 + $0x38] sm:$0xff] }
 0x110   :  { %2162 = vmatmul.bf16.vlgmr.msrb.gmra.mxu3 %v1391_v43  ;;  %2289 = vmatpush.bf16.msra.mxu1 %v3564_v40  ;;  %v3562_v43 = vld [vmem:[#allocation10 + $0x28] sm:$0xff]  ;;  %v3560_v48 = vld [vmem:[#allocation10 + $0x18] sm:$0xff] }
 0x111   :  { %v1293_v33 = vadd.f32 %v1292_v45, %v1280_v46  ;;  %v3561_v46 = vld [vmem:[#allocation10 + $0x20] sm:$0xff] }
 0x113   :  { %v1381_v52 = vmax.f32 %v1293_v33, 0.0  ;;  %v3559_v33 = vld [vmem:[#allocation10 + $0x10] sm:$0xff] }
 0x114   :  { %2290 = vmatpush.bf16.msra.mxu1 %v3563_v42 }
 0x115   :  { %v1392_v54 = vpack.c.bf16 %v1381_v52, %v1381_v52  ;;  %v3557_v52 = vld [vmem:[#allocation10] sm:$0xff] }
 0x116   :  { %v1294_v56 = vpop.f32.mrf.mxu2  ;;  %v1281_v47 = vpop.f32.mrf.mxu0 }
 0x117   :  { %2175 = vmatmul.bf16.vlgmr.msrb.gmra.mxu1 %v1392_v54 }
 0x118   :  { %2291 = vmatpush.bf16.msra.mxu1 %v3562_v43 }
 0x11c   :  { %2292 = vmatpush.bf16.msra.mxu1 %v3561_v46 }
 0x11f   :  { %v1318_v58 = vpop.f32.mrf.mxu1 }
 0x120   :  { %2293 = vmatpush.bf16.msra.mxu1 %v3560_v48 }
 0x124   :  { %2294 = vmatpush.bf16.msra.mxu1 %v3559_v33 }
 0x126   :  { %v1305_v62 = vpop.f32.mrf.mxu3  ;;  %v1344_v55 = vpop.f32.mrf.mxu0 }
 0x127   :  { %v1306_v63 = vadd.f32 %v1305_v62, %v286_v61  ;;  %v1320_v0 = vpop.f32.mrf.mxu1 }
 0x128   :  { %2295 = vmatpush.bf16.msra.mxu1 %v3558_v51 }
 0x129   :  { %v1319_v1 = vadd.f32 %v1318_v58, %v1306_v63 }
 0x12b   :  { %v1382_v3 = vmax.f32 %v1319_v1, 0.0 }
 0x12c   :  { %2296 = vmatpush.bf16.msra.mxu1 %v3557_v52 }
 0x12d   :  { %v1393_v4 = vpack.c.bf16 %v1382_v3, %v1382_v3 }
 0x12e   :  { %v1331_v5 = vpop.f32.mrf.mxu2  ;;  %v1307_v7 = vpop.f32.mrf.mxu3 }
 0x12f   :  { %v1332_v6 = vadd.f32 %v1331_v5, %v287_v2  ;;  %v1346_v8 = vpop.f32.mrf.mxu0  ;;  %2188 = vmatmul.bf16.vlgmr.msrb.gmra.mxu0 %v1393_v4  ;;  %v3576_v2 = vld [vmem:[%s3856_s6] ss:$0 sm:$0xff] }
 0x131   :  { %v1345_v9 = vadd.f32 %v1344_v55, %v1332_v6 }
 0x133   :  { %v1383_v10 = vmax.f32 %v1345_v9, 0.0 }
 0x135   :  { %v1394_v11 = vpack.c.bf16 %v1383_v10, %v1383_v10 }
 0x136   :  { %v1333_v12 = vpop.f32.mrf.mxu2 }
 0x137   :  { %2201 = vmatmul.bf16.vlgmr.msrb.gmra.mxu2 %v1394_v11 }
 0x13e   :  { %v1370_v14 = vpop.f32.mrf.mxu3 }
 0x13f   :  { %v1357_v15 = vpop.f32.mrf.mxu1 }
 0x140   :  { %v1358_v16 = vadd.f32 %v1357_v15, %v288_v13 }
 0x142   :  { %v1371_v17 = vadd.f32 %v1370_v14, %v1358_v16 }
 0x144   :  { %v1384_v18 = vmax.f32 %v1371_v17, 0.0 }
 0x146   :  { %v1395_v19 = vpack.c.bf16 %v1384_v18, %v1384_v18  ;;  %v1372_v20 = vpop.f32.mrf.mxu3  ;;  %v2085_v22 = vpop.f32.mrf.mxu0 }
 0x147   :  { %v1359_v21 = vpop.f32.mrf.mxu1  ;;  %v2086_v25 = vadd.f32 %v3575_v23, %v2085_v22 }
 0x148   :  { %3286 = vmatmul.msk.bf16.vlgmr.msra.gmra.mxu3 %vm2072_vm1, %v1395_v19 }
 0x14e   :  { %v2087_v24 = vpop.f32.mrf.mxu0  ;;  %v2098_v26 = vpop.f32.mrf.mxu2 }
 0x14f   :  { %v2099_v27 = vadd.f32 %v2098_v26, %v2086_v25 }
 0x156   :  { %v2100_v28 = vpop.f32.mrf.mxu2 }
 0x15e   :  { %v2111_v29 = vpop.f32.mrf.mxu3 }
 0x15f   :  { %v2112_v30 = vadd.f32 %v2111_v29, %v2099_v27  ;;  %v2124_v31 = vpop.f32.mrf.mxu1 }
 0x161   :  { %v2125_v32 = vadd.f32 %v2124_v31, %v2112_v30 }
 0x166   :  { %v2113_v34 = vpop.f32.mrf.mxu3 }
 0x167   :  { %v2126_v35 = vpop.f32.mrf.mxu1 }
 0x174   :  { %v2137_v36 = vpop.f32.mrf.mxu0 }
 0x175   :  { %v2138_v37 = vadd.f32 %v2137_v36, %v2125_v32 }
 0x17c   :  { %v2139_v38 = vpop.f32.mrf.mxu0 }
 0x182   :  { %v2150_v39 = vpop.f32.mrf.mxu2 }
 0x183   :  { %v2151_v47 = vadd.f32 %v2150_v39, %v2138_v37 }
 0x18a   :  { %v2152_v41 = vpop.f32.mrf.mxu2 }
 0x193   :  { %v2163_v44 = vpop.f32.mrf.mxu3 }
 0x194   :  { %v2176_v45 = vpop.f32.mrf.mxu1  ;;  %v2164_v57 = vadd.f32 %v2163_v44, %v2151_v47 }
 0x196   :  { %v2177_v59 = vadd.f32 %v2176_v45, %v2164_v57 }
 0x19b   :  { %v2165_v49 = vpop.f32.mrf.mxu3 }
 0x19c   :  { %v2178_v50 = vpop.f32.mrf.mxu1 }
 0x1ac   :  { %v2189_v53 = vpop.f32.mrf.mxu0 }
 0x1ad   :  { %v2190_v60 = vadd.f32 %v2189_v53, %v2177_v59 }
 0x1b4   :  { %v2191_v54 = vpop.f32.mrf.mxu0 }
 0x1ba   :  { %v2202_v56 = vpop.f32.mrf.mxu2 }
 0x1bb   :  { %v2203_v61 = vadd.f32 %v2202_v56, %v2190_v60 }
 0x1c2   :  { %v2204_v58 = vpop.f32.mrf.mxu2 }
 0x1cb   :  { %v2215_v62 = vpop.f32.mrf.mxu3 }
 0x1cc   :  { %v2216_v55 = vadd.f32 %v2215_v62, %v2203_v61 }
 0x1ce   :  { %v2219_v63 = vmax.f32 %v2216_v55, 0.0 }
 0x1d0   :  { %v2220_v0 = vpack.c.bf16 %v2219_v63, %v2219_v63 }
 0x1d2   :  { %2297 = vmatmul.bf16.vlgmr.msra.gmra.mxu1 %v2220_v0 }
 0x1d3   :  { %v2217_v1 = vpop.f32.mrf.mxu3 }
 0x24f   :  { %v2298_v3 = vpop.f32.mrf.mxu1 }
 0x250   :  { %v2299_v4 = vadd.f32 %v3576_v2, %v2298_v3 }
 0x252   :  { %v2302_v5 = vpack.c.bf16 %v2299_v4, %v2299_v4 }
 0x254   :  { %2303 = vst [vmem:[#allocation11] sm:$0xf] %v2302_v5 }
 0x255   :  { %2314 = dma.vmem_to_hbm [thread:$0]  %s2310_s29, 64, %s2312_s9, [#allocation4]  }
 0x257   :  { %v2300_v6 = vpop.f32.mrf.mxu1 }
 0x258   :  { %3727 = dma.done.wait [#allocation4], 64  }
 0x259   :  { %3728 = vsyncadd [#allocation4], 4294967232 }
 0x25a   :  { %2319 = vsyncpa [#allocation3], 1 }
 0x25b   :  { %2320 = vsyncpa [#allocation6], 1 }
 0x25c   :  { %2321 = vsyncpa [#allocation9], 1 }
 0x25d   :  { %2322 = vsyncpa [#allocation4], 1 }

</bundles_post_ra>
